<compile_context>
chip_gen: v6e
topology: v6e:2x2x1
jax: 0.10.0
libtpu: 0.0.40
codegen_flags: <defaults>
</compile_context>

<pallas_src>
import functools
import itertools

import jax
import jax.numpy as jnp
from jax.experimental import pallas as pl
from jax.experimental.pallas import tpu as pltpu

LANE = 128


# ----------------------------------------------------------------------------- hardware budget
@functools.lru_cache(maxsize=None)
def _vmem_budget():
    """Generation-aware per-pallas_call VMEM budget (bytes)."""
    cap = 128 * 1024 * 1024
    try:
        cap = int(getattr(pltpu.get_tpu_info(), "vmem_capacity_bytes", cap))
    except Exception:
        pass
    return min(int(cap) * 5 // 8, 96 * 1024 * 1024)


# ----------------------------------------------------------------------------- helpers
def _ru(x, m):
    return ((x + m - 1) // m) * m


def _pick_tm(m, max_tile=512):
    mp = _ru(m, 8)
    if mp <= max_tile:
        return mp, mp
    return _ru(m, max_tile), max_tile


def _pick_div_tile(n, cap):
    """Largest multiple of 128 dividing n (n is a multiple of 128) that is <= cap."""
    best = LANE
    t = LANE
    while t <= min(n, cap):
        if n % t == 0:
            best = t
        t += LANE
    return best


def _pad_vec(v, n):
    return jnp.pad(v, (0, n - v.shape[0])).astype(jnp.float32)


def _ln_rows(x, w, b, c_real):
    """LayerNorm over the last (channel) axis, statistics restricted to the first c_real
    real channels. Padded channels carry w=b=0 so their output stays 0."""
    C = x.shape[-1]
    if c_real == C:
        mean = jnp.mean(x, axis=-1, keepdims=True)
        cen = x - mean
        var = jnp.mean(cen * cen, axis=-1, keepdims=True)
    else:
        lane = jax.lax.broadcasted_iota(jnp.int32, x.shape[-2:], 1)   # 2-D iota, broadcasts
        m = (lane < c_real).astype(jnp.float32)
        inv = 1.0 / float(c_real)
        mean = jnp.sum(x * m, axis=-1, keepdims=True) * inv
        cen = (x - mean) * m
        var = jnp.sum(cen * cen, axis=-1, keepdims=True) * inv
    y = (x - mean) * jax.lax.rsqrt(var + 1e-6)
    return y * w + b


# ----------------------------------------------------------------------------- fused GEMM
def _gemm_epilogue(r, bias, act, res, lnw, lnb, ln_creal):
    r = r + bias
    if ln_creal is not None:
        r = _ln_rows(r, lnw, lnb, ln_creal)
    if act == "relu":
        r = jnp.maximum(r, 0.0)
    elif act == "gelu":
        # TODO(synk): PyTorch nn.GELU() default is exact erf GELU; tanh approx used here.
        r = 0.5 * r * (1.0 + jnp.tanh(0.7978845608028654 * (r + 0.044715 * r * r * r)))
    if res is not None:
        r = r + res
    return r


def _parse_gemm_refs(refs, has_res, ln_creal, dual):
    a_ref, b_ref, bias_ref = refs[:3]
    pos = 3
    res_ref = None
    if has_res:
        res_ref = refs[pos]
        pos += 1
    lnw_ref = lnb_ref = None
    if ln_creal is not None:
        lnw_ref, lnb_ref = refs[pos], refs[pos + 1]
        pos += 2
    o_ref = refs[pos]
    pos += 1
    o2_ref = refs[pos] if dual else None
    return a_ref, b_ref, bias_ref, res_ref, lnw_ref, lnb_ref, o_ref, o2_ref


def _gemm_single_kernel(*refs, act, has_res, ln_creal, dual):
    (a_ref, b_ref, bias_ref, res_ref, lnw_ref, lnb_ref,
     o_ref, o2_ref) = _parse_gemm_refs(refs, has_res, ln_creal, dual)
    r = jnp.dot(a_ref[...], b_ref[...], preferred_element_type=jnp.float32)
    r = _gemm_epilogue(r, bias_ref[...], act,
                       None if res_ref is None else res_ref[...],
                       None if lnw_ref is None else lnw_ref[...],
                       None if lnb_ref is None else lnb_ref[...], ln_creal)
    o_ref[...] = r.astype(o_ref.dtype)
    if dual:
        o2_ref[...] = jax.nn.sigmoid(r).astype(o2_ref.dtype)


def _gemm_ktiled_kernel(*refs, act, has_res, ln_creal, dual):
    (a_ref, b_ref, bias_ref, res_ref, lnw_ref, lnb_ref,
     o_ref, o2_ref) = _parse_gemm_refs(refs[:-1], has_res, ln_creal, dual)
    acc_ref = refs[-1]
    k = pl.program_id(2)

    @pl.when(k == 0)
    def _init():
        acc_ref[...] = jnp.zeros_like(acc_ref)

    acc_ref[...] += jnp.dot(a_ref[...], b_ref[...], preferred_element_type=jnp.float32)

    @pl.when(k == pl.num_programs(2) - 1)
    def _fin():
        r = _gemm_epilogue(acc_ref[...], bias_ref[...], act,
                           None if res_ref is None else res_ref[...],
                           None if lnw_ref is None else lnw_ref[...],
                           None if lnb_ref is None else lnb_ref[...], ln_creal)
        o_ref[...] = r.astype(o_ref.dtype)
        if dual:
            o2_ref[...] = jax.nn.sigmoid(r).astype(o2_ref.dtype)


def _plan_matmul(M, K, N, *, need_full_rows, has_res, out_bytes):
    budget = _vmem_budget()
    Kp, Np = _ru(K, LANE), _ru(N, LANE)
    big = budget >= 60 * 1024 * 1024
    tm_cap = 1024 if big else 512
    tn_cap = 1024 if big else 512
    resident_cap = max(2 * 1024 * 1024, budget // 8)
    w_bytes = Kp * Np * 2

    def est_resident(tm):
        v = w_bytes + 2 * tm * Kp * 2 + 2 * tm * Np * out_bytes + 16 * Np * 4
        if has_res:
            v += 2 * tm * Np * 4
        return v

    if w_bytes <= resident_cap:
        for cand in (tm_cap, 512, 256, 128, 64, 32, 16, 8):
            if cand > tm_cap:
                continue
            Mp, tm = _pick_tm(M, cand)
            if est_resident(tm) <= budget:
                return dict(mode="resident", Mp=Mp, tm=tm, Kp=Kp, Np=Np, tn=Np, tk=Kp)

    tn = Np if need_full_rows else _pick_div_tile(Np, tn_cap)
    tk = _pick_div_tile(Kp, 512)
    nk = Kp // tk

    def est_tiled(tm):
        v = 2 * tm * tk * 2 + 2 * tk * tn * 2 + 2 * tm * tn * out_bytes + 16 * tn * 4
        if nk > 1:
            v += tm * tn * 4
        if has_res:
            v += 2 * tm * tn * 4
        return v

    for cand in (tm_cap, 512, 256, 128, 64, 32, 16, 8):
        if cand > tm_cap:
            continue
        Mp, tm = _pick_tm(M, cand)
        if est_tiled(tm) <= budget:
            return dict(mode="tiled", Mp=Mp, tm=tm, Kp=Kp, Np=Np, tn=tn, tk=tk)
    Mp, tm = _pick_tm(M, 8)
    return dict(mode="tiled", Mp=Mp, tm=tm, Kp=Kp, Np=Np, tn=tn, tk=tk)


@functools.partial(jax.jit,
                   static_argnames=("act", "c_real", "dual", "out_dtype", "out2_dtype"))
def pallas_matmul(a, b, bias=None, act="none", residual=None, ln_w=None, ln_b=None,
                  c_real=None, dual=False, out_dtype=jnp.float32, out2_dtype=jnp.float32):
    """(M,K)@(K,N)+bias with fused epilogue. bf16 MXU operands, f32 accumulation."""
    M, K = a.shape
    K2, N = b.shape
    assert K == K2
    need_full_rows = ln_w is not None
    has_res = residual is not None
    ob = jnp.dtype(out_dtype).itemsize + (jnp.dtype(out2_dtype).itemsize if dual else 0)
    plan = _plan_matmul(M, K, N, need_full_rows=need_full_rows, has_res=has_res,
                        out_bytes=ob)
    mode, Mp, tm, Kp, Np, tn, tk = (plan[k] for k in
                                    ("mode", "Mp", "tm", "Kp", "Np", "tn", "tk"))

    a = a.astype(jnp.bfloat16)
    b = b.astype(jnp.bfloat16)
    if (Mp, Kp) != (M, K):
        a = jnp.pad(a, ((0, Mp - M), (0, Kp - K)))
    if (Kp, Np) != (K, N):
        b = jnp.pad(b, ((0, Kp - K), (0, Np - N)))
    if bias is None:
        bias = jnp.zeros((Np,), jnp.float32)
    elif bias.shape[0] != Np:
        bias = jnp.pad(bias, (0, Np - bias.shape[0]))
    bias = bias.astype(jnp.float32).reshape(1, Np)

    ln_creal = (c_real if c_real is not None else N) if need_full_rows else None
    kern_kw = dict(act=act, has_res=has_res, ln_creal=ln_creal, dual=dual)

    if mode == "resident":
        grid = (Mp // tm,)
        a_spec = pl.BlockSpec((tm, Kp), lambda i: (i, 0))
        b_spec = pl.BlockSpec((Kp, Np), lambda i: (0, 0))
        v_spec = pl.BlockSpec((1, Np), lambda i: (0, 0))
        r_spec = pl.BlockSpec((tm, Np), lambda i: (i, 0))
        o_spec = pl.BlockSpec((tm, Np), lambda i: (i, 0))
        dims = ("parallel",)
        kernel = functools.partial(_gemm_single_kernel, **kern_kw)
        scratch = []
    else:
        nk = Kp // tk
        if nk == 1:
            grid = (Mp // tm, Np // tn)
            a_spec = pl.BlockSpec((tm, Kp), lambda i, j: (i, 0))
            b_spec = pl.BlockSpec((Kp, tn), lambda i, j: (0, j))
            v_spec = pl.BlockSpec((1, tn), lambda i, j: (0, j))
            r_spec = pl.BlockSpec((tm, tn), lambda i, j: (i, j))
            o_spec = pl.BlockSpec((tm, tn), lambda i, j: (i, j))
            dims = ("parallel", "parallel")
            kernel = functools.partial(_gemm_single_kernel, **kern_kw)
            scratch = []
        else:
            grid = (Mp // tm, Np // tn, nk)
            a_spec = pl.BlockSpec((tm, tk), lambda i, j, k: (i, k))
            b_spec = pl.BlockSpec((tk, tn), lambda i, j, k: (k, j))
            v_spec = pl.BlockSpec((1, tn), lambda i, j, k: (0, j))
            r_spec = pl.BlockSpec((tm, tn), lambda i, j, k: (i, j))
            o_spec = pl.BlockSpec((tm, tn), lambda i, j, k: (i, j))
            dims = ("parallel", "parallel", "arbitrary")
            kernel = functools.partial(_gemm_ktiled_kernel, **kern_kw)
            scratch = [pltpu.VMEM((tm, tn), jnp.float32)]

    inputs = [a, b, bias]
    in_specs = [a_spec, b_spec, v_spec]
    if has_res:
        r = residual.astype(jnp.float32)
        if r.shape != (Mp, Np):
            r = jnp.pad(r, ((0, Mp - r.shape[0]), (0, Np - r.shape[1])))
        inputs.append(r)
        in_specs.append(r_spec)
    if need_full_rows:
        lw = ln_w.astype(jnp.float32)
        lb = ln_b.astype(jnp.float32)
        if lw.shape[0] != Np:
            lw = jnp.pad(lw, (0, Np - lw.shape[0]))
            lb = jnp.pad(lb, (0, Np - lb.shape[0]))
        inputs += [lw.reshape(1, Np), lb.reshape(1, Np)]
        in_specs += [v_spec, v_spec]

    if dual:
        out_shape = (jax.ShapeDtypeStruct((Mp, Np), out_dtype),
                     jax.ShapeDtypeStruct((Mp, Np), out2_dtype))
        out_specs = (o_spec, o_spec)
    else:
        out_shape = jax.ShapeDtypeStruct((Mp, Np), out_dtype)
        out_specs = o_spec

    out = pl.pallas_call(
        kernel,
        out_shape=out_shape,
        grid_spec=pltpu.PrefetchScalarGridSpec(
            num_scalar_prefetch=0, grid=grid,
            in_specs=in_specs, out_specs=out_specs, scratch_shapes=scratch),
        compiler_params=pltpu.CompilerParams(
            dimension_semantics=dims, vmem_limit_bytes=_vmem_budget()),
    )(*inputs)

    if dual:
        return out[0][:M, :N], out[1][:M, :N]
    return out[:M, :N]


# ----------------------------------------------------------------------------- LayerNorm kernel
def _ln_kernel(x_ref, w_ref, b_ref, o_ref, *, c_real):
    o_ref[...] = _ln_rows(x_ref[...], w_ref[...], b_ref[...], c_real).astype(o_ref.dtype)


@functools.partial(jax.jit, static_argnames=("c_real", "out_dtype"))
def pallas_layernorm(x2d, w, b, c_real, out_dtype=jnp.float32):
    """Per-row LayerNorm over the (padded) channel axis, eps=1e-6, masked to c_real."""
    # TODO(synk): for the pre-downsample use this could be fused into the previous block's
    #             pwconv2 epilogue as a second output (removes one activation pass).
    M, C = x2d.shape
    Mp, tm = _pick_tm(M, 512)
    if Mp != M:
        x2d = jnp.pad(x2d, ((0, Mp - M), (0, 0)))
    out = pl.pallas_call(
        functools.partial(_ln_kernel, c_real=c_real),
        out_shape=jax.ShapeDtypeStruct((Mp, C), out_dtype),
        grid_spec=pltpu.PrefetchScalarGridSpec(
            num_scalar_prefetch=0,
            grid=(Mp // tm,),
            in_specs=[pl.BlockSpec((tm, C), lambda i: (i, 0)),
                      pl.BlockSpec((1, C), lambda i: (0, 0)),
                      pl.BlockSpec((1, C), lambda i: (0, 0))],
            out_specs=pl.BlockSpec((tm, C), lambda i: (i, 0))),
        compiler_params=pltpu.CompilerParams(
            dimension_semantics=("parallel",),
            vmem_limit_bytes=_vmem_budget()),
    )(x2d, w.reshape(1, C), b.reshape(1, C))
    return out[:M]


# ----------------------------------------------------------------------------- depthwise 7x7 + LN
def _pick_dw_tiles(H, W, C):
    cap = max(32, 16384 // max(C, 1))          # output positions per tile (f32 acc <= 64 KiB)
    if W <= cap:
        tw = W
    else:
        tw = 0
        d = 8
        while d <= cap:
            if W % d == 0:
                tw = d
            d += 8
        if tw == 0:
            tw = W
    th = 1
    d = 1
    while d <= H:
        if H % d == 0 and d * tw <= max(cap, tw):
            th = d
        d += 1
    return th, tw


def _dwconv_ln_kernel(x_ref, w_ref, b_ref, lnw_ref, lnb_ref, o_ref, *, th, tw, c_real,
                      single_w):
    h0 = pl.multiple_of(pl.program_id(1) * th, th)
    if single_w:
        x = x_ref[0, pl.ds(h0, th + 6)]                        # (th+6, W+6, C)
    else:
        w0 = pl.multiple_of(pl.program_id(2) * tw, tw)
        x = x_ref[0, pl.ds(h0, th + 6), pl.ds(w0, tw + 6)]     # (th+6, tw+6, C)
    wt = w_ref[...]                                            # (7, 7, C)
    C = x.shape[-1]
    acc = jnp.zeros((th, tw, C), jnp.float32)
    # TODO(synk): the kw taps are unaligned sublane slices; pltpu.roll (XLU) shifts would be
    #             cheaper but static slices are kept for lowering robustness.
    for kh in range(7):
        xs = x[kh:kh + th].astype(jnp.float32)                 # (th, tw+6, C)
        for kw in range(7):
            acc = acc + xs[:, kw:kw + tw, :] * wt[kh, kw][None, None, :]
    r = acc + b_ref[...]
    r = _ln_rows(r, lnw_ref[...], lnb_ref[...], c_real)
    o_ref[0] = r.astype(o_ref.dtype)


@functools.partial(jax.jit, static_argnames=("c_real",))
def pallas_dwconv7_ln(x, dw_w, dw_b, ln_w, ln_b, c_real):
    """Depthwise 7x7 conv (padding=3, groups=C) in NHWC with the following channels-last
    LayerNorm fused into the epilogue. Output is bf16 (it feeds the pwconv1 GEMM)."""
    B, H, W, C = x.shape
    th, tw = _pick_dw_tiles(H, W, C)
    single_w = (tw == W)
    xp = jnp.pad(x.astype(jnp.bfloat16), ((0, 0), (3, 3), (3, 3), (0, 0)))
    return pl.pallas_call(
        functools.partial(_dwconv_ln_kernel, th=th, tw=tw, c_real=c_real, single_w=single_w),
        out_shape=jax.ShapeDtypeStruct((B, H, W, C), jnp.bfloat16),
        grid_spec=pltpu.PrefetchScalarGridSpec(
            num_scalar_prefetch=0,
            grid=(B, H // th, W // tw),
            in_specs=[pl.BlockSpec((1, H + 6, W + 6, C), lambda b, i, j: (b, 0, 0, 0)),
                      pl.BlockSpec((7, 7, C), lambda b, i, j: (0, 0, 0)),
                      pl.BlockSpec((1, 1, C), lambda b, i, j: (0, 0, 0)),
                      pl.BlockSpec((1, 1, C), lambda b, i, j: (0, 0, 0)),
                      pl.BlockSpec((1, 1, C), lambda b, i, j: (0, 0, 0))],
            out_specs=pl.BlockSpec((1, th, tw, C), lambda b, i, j: (b, i, j, 0))),
        compiler_params=pltpu.CompilerParams(
            dimension_semantics=("parallel", "parallel", "parallel"),
            vmem_limit_bytes=_vmem_budget()),
    )(xp, dw_w, dw_b.reshape(1, 1, C), ln_w.reshape(1, 1, C), ln_b.reshape(1, 1, C))


# ----------------------------------------------------------------------------- fused 3x3 conv
def _conv3_kernel(x_ref, w_ref, b_ref, o_ref, *, th, W, cin, act):
    h0 = pl.multiple_of(pl.program_id(1) * th, th)
    x = x_ref[0, pl.ds(h0, th + 2)]                            # (th+2, W+2, cin) bf16
    cout = o_ref.shape[-1]
    acc = jnp.zeros((th * W, cout), jnp.float32)
    for kh in range(3):
        xs = x[kh:kh + th]                                     # (th, W+2, cin)
        for kw in range(3):
            a2 = xs[:, kw:kw + W, :].reshape(th * W, cin)      # VMEM-built tap (no HBM im2col)
            wk = w_ref[(kh * 3 + kw) * cin:(kh * 3 + kw + 1) * cin, :]
            acc = acc + jnp.dot(a2, wk, preferred_element_type=jnp.float32)
    r = acc + b_ref[...]
    if act == "relu":
        r = jnp.maximum(r, 0.0)
    o_ref[0] = r.reshape(th, W, cout).astype(o_ref.dtype)


@functools.partial(jax.jit, static_argnames=("act", "out_dtype"))
def pallas_conv3(x, Wg, bias=None, *, act="none", out_dtype=jnp.float32):
    """3x3 stride-1 pad-1 conv in NHWC (channel-padded). Patch taps built in VMEM from a
    row-haloed slab; falls back to HBM im2col + fused GEMM for unfriendly shapes."""
    B, H, W, Cin = x.shape
    Cout = Wg.shape[1]
    budget = _vmem_budget()
    out_bytes = jnp.dtype(out_dtype).itemsize
    cap_rows = 512 if budget >= 60 * 1024 * 1024 else 256

    friendly = (W >= 8) and (W % 8 == 0) and (Cin % LANE == 0) and (Cout % LANE == 0)
    th = 1
    if friendly:
        for d in range(1, H + 1):
            if H % d == 0 and d * W <= cap_rows:
                th = d
        est = (2 * (H + 2) * (W + 2) * Cin * 2 + 2 * 9 * Cin * Cout * 2
               + 2 * th * W * Cout * out_bytes + 2 * th * W * Cout * 4
               + th * (W + 2) * Cin * 2 + 9 * Cout * 4)
        if est > budget:
            friendly = False
    if not friendly:
        return conv_gemm(x, Wg, bias, k=3, stride=1, pad=1, act=act, out_dtype=out_dtype)

    if bias is None:
        bias_v = jnp.zeros((Cout,), jnp.float32)
    else:
        bias_v = bias.astype(jnp.float32)
        if bias_v.shape[0] != Cout:
            bias_v = jnp.pad(bias_v, (0, Cout - bias_v.shape[0]))
    xp = jnp.pad(x.astype(jnp.bfloat16), ((0, 0), (1, 1), (1, 1), (0, 0)))
    return pl.pallas_call(
        functools.partial(_conv3_kernel, th=th, W=W, cin=Cin, act=act),
        out_shape=jax.ShapeDtypeStruct((B, H, W, Cout), out_dtype),
        grid_spec=pltpu.PrefetchScalarGridSpec(
            num_scalar_prefetch=0,
            grid=(B, H // th),
            in_specs=[pl.BlockSpec((1, H + 2, W + 2, Cin), lambda b, i: (b, 0, 0, 0)),
                      pl.BlockSpec((9 * Cin, Cout), lambda b, i: (0, 0)),
                      pl.BlockSpec((1, Cout), lambda b, i: (0, 0))],
            out_specs=pl.BlockSpec((1, th, W, Cout), lambda b, i: (b, i, 0, 0))),
        compiler_params=pltpu.CompilerParams(
            dimension_semantics=("parallel", "parallel"),
            vmem_limit_bytes=budget),
    )(xp, Wg.astype(jnp.bfloat16), bias_v.reshape(1, Cout))


# ----------------------------------------------------------------------------- ConvLSTM GEMM
def _lstm_gates(g, c, cp, ch_ref, cc_ref):
    ci = jax.nn.sigmoid(g[:, 0:cp])
    cf = jax.nn.sigmoid(g[:, cp:2 * cp])
    cc = cf * c + ci * jnp.tanh(g[:, 2 * cp:3 * cp])
    co = jax.nn.sigmoid(g[:, 3 * cp:4 * cp])
    cc_ref[...] = cc
    ch_ref[...] = co * jnp.tanh(cc)


def _lstm_single_kernel(ax_ref, ah_ref, wx_ref, wh_ref, b_ref, c_ref, ch_ref, cc_ref, *, cp):
    g = jnp.dot(ax_ref[...], wx_ref[...], preferred_element_type=jnp.float32)
    g = g + jnp.dot(ah_ref[...], wh_ref[...], preferred_element_type=jnp.float32)
    _lstm_gates(g + b_ref[...], c_ref[...], cp, ch_ref, cc_ref)


def _lstm_ktiled_kernel(ax_ref, ah_ref, wx_ref, wh_ref, b_ref, c_ref, ch_ref, cc_ref,
                        acc_ref, *, cp):
    @pl.when(pl.program_id(1) == 0)
    def _init():
        acc_ref[...] = jnp.zeros_like(acc_ref)

    acc_ref[...] += (jnp.dot(ax_ref[...], wx_ref[...], preferred_element_type=jnp.float32)
                     + jnp.dot(ah_ref[...], wh_ref[...], preferred_element_type=jnp.float32))

    @pl.when(pl.program_id(1) == pl.num_programs(1) - 1)
    def _fin():
        _lstm_gates(acc_ref[...] + b_ref[...], c_ref[...], cp, ch_ref, cc_ref)


def _lstm_gemm(ax, ah, Wx, Wh, bg, c):
    """Fused ConvLSTM cell GEMM: two operands (x-patches, h-patches), gate nonlinearities
    and (h, c) emission in the epilogue (no HBM concat, no HBM gates tensor)."""
    M, K = ax.shape
    cp = c.shape[1]
    N = 4 * cp
    budget = _vmem_budget()
    resident_cap = max(2 * 1024 * 1024, budget // 8)
    Mp, tm = _pick_tm(M, 512)
    if Mp != M:
        ax = jnp.pad(ax, ((0, Mp - M), (0, 0)))
        ah = jnp.pad(ah, ((0, Mp - M), (0, 0)))
        c = jnp.pad(c, ((0, Mp - M), (0, 0)))

    w_bytes = 2 * K * N * 2
    resident = w_bytes <= resident_cap
    if resident:
        grid = (Mp // tm,)
        in_specs = [pl.BlockSpec((tm, K), lambda i: (i, 0)),
                    pl.BlockSpec((tm, K), lambda i: (i, 0)),
                    pl.BlockSpec((K, N), lambda i: (0, 0)),
                    pl.BlockSpec((K, N), lambda i: (0, 0)),
                    pl.BlockSpec((1, N), lambda i: (0, 0)),
                    pl.BlockSpec((tm, cp), lambda i: (i, 0))]
        out_spec = pl.BlockSpec((tm, cp), lambda i: (i, 0))
        kernel = functools.partial(_lstm_single_kernel, cp=cp)
        scratch = []
        dims = ("parallel",)
    else:
        tk = _pick_div_tile(K, 512)
        grid = (Mp // tm, K // tk)
        in_specs = [pl.BlockSpec((tm, tk), lambda i, k: (i, k)),
                    pl.BlockSpec((tm, tk), lambda i, k: (i, k)),
                    pl.BlockSpec((tk, N), lambda i, k: (k, 0)),
                    pl.BlockSpec((tk, N), lambda i, k: (k, 0)),
                    pl.BlockSpec((1, N), lambda i, k: (0, 0)),
                    pl.BlockSpec((tm, cp), lambda i, k: (i, 0))]
        out_spec = pl.BlockSpec((tm, cp), lambda i, k: (i, 0))
        kernel = functools.partial(_lstm_ktiled_kernel, cp=cp)
        scratch = [pltpu.VMEM((tm, N), jnp.float32)]
        dims = ("parallel", "arbitrary")

    ch, cc = pl.pallas_call(
        kernel,
        out_shape=(jax.ShapeDtypeStruct((Mp, cp), jnp.float32),
                   jax.ShapeDtypeStruct((Mp, cp), jnp.float32)),
        grid_spec=pltpu.PrefetchScalarGridSpec(
            num_scalar_prefetch=0, grid=grid, in_specs=in_specs,
            out_specs=(out_spec, out_spec), scratch_shapes=scratch),
        compiler_params=pltpu.CompilerParams(
            dimension_semantics=dims, vmem_limit_bytes=budget),
    )(ax.astype(jnp.bfloat16), ah.astype(jnp.bfloat16), Wx, Wh, bg.reshape(1, N), c)
    return ch[:M], cc[:M]


# ----------------------------------------------------------------------------- JAX glue
def _im2col_nhwc(x, k, stride, pad):
    """NHWC x -> bf16 patch matrix (B*OH*OW, k*k*C); column order (kh, kw, c)."""
    B, H, W, C = x.shape
    OH = (H + 2 * pad - k) // stride + 1
    OW = (W + 2 * pad - k) // stride + 1
    if pad:
        x = jnp.pad(x, ((0, 0), (pad, pad), (pad, pad), (0, 0)))
    x = x.astype(jnp.bfloat16)
    cols = []
    for kh in range(k):
        for kw in range(k):
            cols.append(x[:, kh:kh + stride * (OH - 1) + 1:stride,
                            kw:kw + stride * (OW - 1) + 1:stride, :])
    patches = jnp.stack(cols, axis=3)                # (B, OH, OW, k*k, C)
    return patches.reshape(B * OH * OW, k * k * C), (B, OH, OW)


@functools.partial(jax.jit,
                   static_argnames=("k", "stride", "pad", "act", "c_real", "dual",
                                    "out_dtype", "out2_dtype"))
def conv_gemm(x, Wg, bias=None, *, k, stride, pad, act="none", ln_w=None, ln_b=None,
              c_real=None, dual=False, out_dtype=jnp.float32, out2_dtype=jnp.float32):
    """Standard conv (NHWC, channel-padded) via NHWC im2col + fused Pallas GEMM."""
    patches, (B, OH, OW) = _im2col_nhwc(x, k, stride, pad)
    y = pallas_matmul(patches, Wg, bias, act=act, ln_w=ln_w, ln_b=ln_b, c_real=c_real,
                      dual=dual, out_dtype=out_dtype, out2_dtype=out2_dtype)
    N = Wg.shape[1]
    if dual:
        return y[0].reshape(B, OH, OW, N), y[1].reshape(B, OH, OW, N)
    return y.reshape(B, OH, OW, N)


def stem_forward(x, sp):
    cin = x.shape[-1]
    if sp["cin_p"] != cin:
        x = jnp.pad(x, ((0, 0), (0, 0), (0, 0), (0, sp["cin_p"] - cin)))
    return conv_gemm(x, sp["W"], sp["b"], k=4, stride=4, pad=0,
                     ln_w=sp["ln_w"], ln_b=sp["ln_b"], c_real=sp["c_real"])


def downsample_forward(x, dp):
    B, H, W, C = x.shape
    xl = pallas_layernorm(x.reshape(-1, C), dp["ln_w"], dp["ln_b"],
                          c_real=dp["c_real"], out_dtype=jnp.bfloat16)
    return conv_gemm(xl.reshape(B, H, W, C), dp["W"], dp["b"], k=2, stride=2, pad=0)


def block_forward(x, bp):
    """ConvNeXt Block (drop_path=0, eval); layer-scale gamma folded into pwconv2 weights."""
    B, H, W, C = x.shape
    y = pallas_dwconv7_ln(x, bp["dw_w"], bp["dw_b"], bp["ln_w"], bp["ln_b"],
                          c_real=bp["c_real"])
    h = pallas_matmul(y.reshape(-1, C), bp["W1"], bp["b1"], act="gelu",
                      out_dtype=jnp.bfloat16)
    out = pallas_matmul(h, bp["W2"], bp["b2"], residual=x.reshape(-1, C))
    return out.reshape(B, H, W, C)


def run_stage(x, blocks):
    for bp in blocks:
        x = block_forward(x, bp)
    return x


@jax.jit
def convlstm_step(lp, x, h, c):
    """ConvLSTMCell: one fused two-operand GEMM for all 8 gate convs; the epilogue performs
    the gate nonlinearities and emits (h, c) directly. Peephole weights Wci/Wcf/Wco are
    zero-initialized parameters in the reference (init_hidden), so their contribution is
    identically zero and omitted."""
    B, H, W, C = x.shape
    px, _ = _im2col_nhwc(x, 3, 1, 1)
    ph, _ = _im2col_nhwc(h, 3, 1, 1)
    ch, cc = _lstm_gemm(px, ph, lp["Wx"], lp["Wh"], lp["b"], c.reshape(-1, C))
    return ch.reshape(B, H, W, C), cc.reshape(B, H, W, C)


def decoder_forward(dp, x1, x2):
    """Decoder: ConvTranspose2d(k=2,s=2) as one GEMM, channel-concat, fused 3x3 conv + ReLU."""
    B, H, W, C1 = x1.shape
    cp_o = dp["cout_p"]
    u = pallas_matmul(x1.reshape(-1, C1), dp["up_W"], dp["up_b"], out_dtype=jnp.bfloat16)
    # TODO(synk): the 2x2 interleave below is still an XLA relayout; emitting interleaved
    #             rows directly from the up-GEMM would remove one HBM pass per level.
    u = u.reshape(B, H, W, 2, 2, cp_o).transpose(0, 1, 3, 2, 4, 5).reshape(B, 2 * H, 2 * W, cp_o)
    cat = jnp.concatenate([u, x2.astype(jnp.bfloat16)], axis=-1)
    return pallas_conv3(cat, dp["W"], dp["b"], act="relu")


def _interp_matrix(in_size, out_size):
    """Bilinear interpolation matrix (align_corners=True)."""
    if in_size == 1:
        return jnp.ones((out_size, 1), jnp.float32)
    pos = jnp.arange(out_size, dtype=jnp.float32) * (in_size - 1) / (out_size - 1)
    lo = jnp.clip(jnp.floor(pos).astype(jnp.int32), 0, in_size - 2)
    frac = pos - lo.astype(jnp.float32)
    L = jnp.zeros((out_size, in_size), jnp.float32)
    L = L.at[jnp.arange(out_size), lo].add(1.0 - frac)
    L = L.at[jnp.arange(out_size), lo + 1].add(frac)
    return L


def bilinear_upsample4(x):
    """nn.Upsample(scale_factor=4, bilinear, align_corners=True) on NHWC as two GEMMs
    (now N-tiled / VMEM-bounded via the GEMM planner)."""
    # TODO(synk): a 2-tap VPU interpolation kernel would avoid the MXU waste and the
    #             transpose relayouts; kept as GEMMs for robustness.
    B, H, W, C = x.shape
    OH, OW = 4 * H, 4 * W
    Lh, Lw = _interp_matrix(H, OH), _interp_matrix(W, OW)
    t = pallas_matmul(Lh, jnp.transpose(x, (1, 0, 2, 3)).reshape(H, B * W * C),
                      out_dtype=jnp.bfloat16)
    t = jnp.transpose(t.reshape(OH, B, W, C), (1, 0, 2, 3))          # (B, OH, W, C)
    u = pallas_matmul(Lw, jnp.transpose(t, (2, 0, 1, 3)).reshape(W, B * OH * C),
                      out_dtype=jnp.bfloat16)
    return jnp.transpose(u.reshape(OW, B, OH, C), (1, 2, 0, 3))      # (B, OH, OW, C)


def decode0_forward(dp, x):
    u = bilinear_upsample4(x)
    y = pallas_conv3(u, dp["W1"], None, out_dtype=jnp.bfloat16)
    return pallas_conv3(y, dp["W2"], None, out_dtype=jnp.bfloat16)


# ----------------------------------------------------------------------------- full forward
def unet_seq2seq_forward(params, inp, inp2, cloud_mask, out_step):
    """inp: (B,T,Cin,H,W); inp2/cloud_mask: (B,out_step,Cout,H,W) (NCHW like the PyTorch
    module). Returns sigmoid(output) with shape (B,out_step,Cout,H,W)."""
    B, T, _, H, W = inp.shape
    cps = params["cps"]
    Cout = params["out_channels"]

    # single layout conversion; everything downstream stays NHWC / channel-padded.
    inp = jnp.transpose(inp, (0, 1, 3, 4, 2))
    inp2 = jnp.transpose(inp2, (0, 1, 3, 4, 2))
    cloud_mask = jnp.transpose(cloud_mask, (0, 1, 3, 4, 2))

    sp = [H // 4, H // 8, H // 16, H // 32]
    eh = [jnp.zeros((B, sp[i], sp[i], cps[i]), jnp.float32) for i in range(4)]
    ec = [jnp.zeros((B, sp[i], sp[i], cps[i]), jnp.float32) for i in range(4)]

    # encoder over input time steps
    for t in range(T):
        e = stem_forward(inp[:, t], params["stem"])
        e = run_stage(e, params["stages"][0])
        eh[0], ec[0] = convlstm_step(params["eclstm"][0], e, eh[0], ec[0])
        for lvl in range(1, 4):
            e = downsample_forward(e, params["ds"][lvl])
            e = run_stage(e, params["stages"][lvl])
            eh[lvl], ec[lvl] = convlstm_step(params["eclstm"][lvl], e, eh[lvl], ec[lvl])

    dh, dc = list(eh), list(ec)
    outs_pre, outs_sig = [], []
    for j in range(out_step):
        if j == 0:
            for lvl in (3, 2, 1, 0):
                dh[lvl], dc[lvl] = convlstm_step(params["dclstm"][lvl], dh[lvl], dh[lvl], dc[lvl])
        else:
            # input2[:, j-1][~cloud_mask] = output[:, j-1][~cloud_mask]  (pre-sigmoid output)
            x2 = jnp.where(cloud_mask[:, j - 1], inp2[:, j - 1], outs_pre[j - 1])
            l = stem_forward(x2, params["stem2"])
            l = run_stage(l, params["stages"][0])
            ls = [l]
            for lvl in range(1, 4):
                l = downsample_forward(l, params["ds"][lvl])
                l = run_stage(l, params["stages"][lvl])
                ls.append(l)
            for lvl in (3, 2, 1, 0):
                dh[lvl], dc[lvl] = convlstm_step(params["dclstm"][lvl], ls[lvl], dh[lvl], dc[lvl])

        d3 = decoder_forward(params["decode3"], dh[3], dh[2])
        d2 = decoder_forward(params["decode2"], d3, dh[1])
        d1 = decoder_forward(params["decode1"], d2, dh[0])
        d0 = decode0_forward(params["decode0"], d1)
        pre, sig = conv_gemm(d0, params["last_W"], params["last_b"],
                             k=1, stride=1, pad=0, dual=True,
                             out_dtype=jnp.bfloat16, out2_dtype=jnp.float32)
        outs_pre.append(pre[..., :Cout])
        outs_sig.append(sig[..., :Cout])

    out = jnp.stack(outs_sig, axis=1)                 # (B, out_step, H, W, Cout)
    return jnp.transpose(out, (0, 1, 4, 2, 3))        # back to NCHW like the reference


# ----------------------------------------------------------------------------- parameter init
def _prep_conv(w, b, cin_groups):
    """w: (Cout, Cin, k, k) (PyTorch layout). cin_groups: [(real, padded), ...] describing
    the (channel-padded NHWC) layout of the input-channel axis. Returns a GEMM-ready bf16
    matrix (k*k*sum(padded), Cout_pad) with row order (kh, kw, cin_padded), plus f32 bias."""
    Cout, _, k, _ = w.shape
    cout_p = _ru(Cout, LANE)
    wt = jnp.transpose(w, (2, 3, 1, 0))               # (k, k, Cin, Cout)
    parts, off = [], 0
    for real, padded in cin_groups:
        part = wt[:, :, off:off + real, :]
        parts.append(jnp.pad(part, ((0, 0), (0, 0), (0, padded - real), (0, cout_p - Cout))))
        off += real
    wp = jnp.concatenate(parts, axis=2)
    W = wp.reshape(k * k * wp.shape[2], cout_p).astype(jnp.bfloat16)
    bias = None if b is None else _pad_vec(b, cout_p)
    return W, bias


def init_params(key, input_channels, out_channels, dims, depths):
    counter = itertools.count(1)

    def nk():
        return jax.random.fold_in(key, next(counter))

    def wn(shape):
        return 0.02 * jax.random.normal(nk(), shape, jnp.float32)

    zeros = lambda s: jnp.zeros(s, jnp.float32)
    ones = lambda s: jnp.ones(s, jnp.float32)

    cps = [_ru(d, LANE) for d in dims]
    p = {"dims": tuple(dims), "cps": tuple(cps), "out_channels": out_channels}

    def make_stem(cin, d, cp_):
        cin_p = _ru(cin, 8)                            # so K = 16*cin_p is a multiple of 128
        W, bias = _prep_conv(wn((d, cin, 4, 4)), zeros((d,)), [(cin, cin_p)])
        return dict(W=W, b=bias, cin_p=cin_p, c_real=d,
                    ln_w=_pad_vec(ones((d,)), cp_), ln_b=_pad_vec(zeros((d,)), cp_))

    p["stem"] = make_stem(input_channels, dims[0], cps[0])
    p["stem2"] = make_stem(out_channels, dims[0], cps[0])

    p["ds"] = [None]
    for i in range(1, 4):
        W, bias = _prep_conv(wn((dims[i], dims[i - 1], 2, 2)), zeros((dims[i],)),
                             [(dims[i - 1], cps[i - 1])])
        p["ds"].append(dict(W=W, b=bias, c_real=dims[i - 1],
                            ln_w=_pad_vec(ones((dims[i - 1],)), cps[i - 1]),
                            ln_b=_pad_vec(zeros((dims[i - 1],)), cps[i - 1])))

    p["stages"] = []
    for i, d in enumerate(dims):
        cp_ = cps[i]
        hid = _ru(4 * d, LANE)
        blocks = []
        for _ in range(depths[i]):
            dw = wn((d, 1, 7, 7))
            w1, b1 = wn((4 * d, d)), zeros((4 * d,))
            w2, b2 = wn((d, 4 * d)), zeros((d,))
            gamma = 1e-6 * ones((d,))
            blocks.append(dict(
                dw_w=jnp.pad(jnp.transpose(dw[:, 0], (1, 2, 0)), ((0, 0), (0, 0), (0, cp_ - d))),
                dw_b=_pad_vec(zeros((d,)), cp_),
                ln_w=_pad_vec(ones((d,)), cp_),
                ln_b=_pad_vec(zeros((d,)), cp_),
                W1=jnp.pad(w1.T, ((0, cp_ - d), (0, hid - 4 * d))).astype(jnp.bfloat16),
                b1=_pad_vec(b1, hid),
                # layer-scale gamma folded: gamma*(x@W2.T + b2) == x@(W2.T*gamma) + b2*gamma
                W2=jnp.pad(w2.T * gamma[None, :], ((0, hid - 4 * d), (0, cp_ - d))).astype(jnp.bfloat16),
                b2=_pad_vec(b2 * gamma, cp_),
                c_real=d))
        p["stages"].append(blocks)

    def make_lstm(d, cp_):
        Wx = [wn((d, d, 3, 3)) for _ in range(4)]      # gate order: i, f, c, o
        Wh = [wn((d, d, 3, 3)) for _ in range(4)]
        bx = [zeros((d,)) for _ in range(4)]

        def gemm_w(gs):
            cols = []
            for g in gs:
                w = jnp.pad(jnp.transpose(g, (2, 3, 1, 0)),
                            ((0, 0), (0, 0), (0, cp_ - d), (0, cp_ - d))).reshape(9 * cp_, cp_)
                cols.append(w)
            return jnp.concatenate(cols, axis=1).astype(jnp.bfloat16)

        return dict(Wx=gemm_w(Wx), Wh=gemm_w(Wh),
                    b=jnp.concatenate([_pad_vec(t, cp_) for t in bx]))

    p["eclstm"] = [make_lstm(dims[i], cps[i]) for i in range(4)]
    p["dclstm"] = [make_lstm(dims[i], cps[i]) for i in range(4)]

    def make_decoder(cin, cin_p, cskip, cskip_p, cout, cout_p):
        wt, bt = wn((cin, cout, 2, 2)), zeros((cout,))     # ConvTranspose2d(cin, cout, 2, 2)
        up_W = jnp.pad(jnp.transpose(wt, (0, 2, 3, 1)),
                       ((0, cin_p - cin), (0, 0), (0, 0), (0, cout_p - cout)))
        up_W = up_W.reshape(cin_p, 4 * cout_p).astype(jnp.bfloat16)
        up_b = jnp.tile(_pad_vec(bt, cout_p), 4)
        W, bias = _prep_conv(wn((cout, cout + cskip, 3, 3)), zeros((cout,)),
                             [(cout, cout_p), (cskip, cskip_p)])
        return dict(up_W=up_W, up_b=up_b, cout_p=cout_p, W=W, b=bias)

    p["decode3"] = make_decoder(dims[3], cps[3], dims[2], cps[2], dims[2], cps[2])
    p["decode2"] = make_decoder(dims[2], cps[2], dims[1], cps[1], dims[1], cps[1])
    p["decode1"] = make_decoder(dims[1], cps[1], dims[0], cps[0], dims[0], cps[0])

    c0, c0p = dims[0], cps[0]
    cm, cmp_ = dims[0] // 2, _ru(dims[0] // 2, LANE)
    W1, _ = _prep_conv(wn((cm, c0, 3, 3)), None, [(c0, c0p)])
    W2, _ = _prep_conv(wn((c0, cm, 3, 3)), None, [(cm, cmp_)])
    p["decode0"] = dict(W1=W1, W2=W2)

    lW, lb = _prep_conv(wn((out_channels, dims[0], 1, 1)), zeros((out_channels,)),
                        [(dims[0], cps[0])])
    p["last_W"], p["last_b"] = lW, lb
    return p


# ----------------------------------------------------------------------------- main
if __name__ == "__main__":
    # Small test configuration (channel widths / depths scaled down from [96,192,384,768]/[3,3,9,3]).
    B, T, H, W = 1, 2, 64, 64
    input_channels, out_channels, out_step = 4, 4, 2
    dims = [32, 64, 128, 256]
    depths = [1, 1, 1, 1]

    params = init_params(jax.random.PRNGKey(42), input_channels, out_channels, dims, depths)

    k1, k2, k3 = jax.random.split(jax.random.PRNGKey(0), 3)
    inp = jax.random.normal(k1, (B, T, input_channels, H, W), jnp.float32)
    inp2 = jax.random.normal(k2, (B, out_step, out_channels, H, W), jnp.float32)
    cloud_mask = jax.random.bernoulli(k3, 0.5, (B, out_step, out_channels, H, W))

    out = unet_seq2seq_forward(params, inp, inp2, cloud_mask, out_step)
    out = jax.block_until_ready(out)

    assert out.shape == (B, out_step, out_channels, H, W), out.shape
    assert bool(jnp.all(jnp.isfinite(out)))
    print("KERNEL_OK")
</pallas_src>

<mosaic_0001>
module attributes {stable_mosaic.version = 11 : i64} {
  func.func @_gemm_single_kernel(%arg0: i32, %arg1: memref<256x128xbf16, #tpu.memory_space<vmem>>, %arg2: memref<128x128xbf16, #tpu.memory_space<vmem>>, %arg3: memref<1x128xf32, #tpu.memory_space<vmem>>, %arg4: memref<1x128xf32, #tpu.memory_space<vmem>>, %arg5: memref<1x128xf32, #tpu.memory_space<vmem>>, %arg6: memref<256x128xf32, #tpu.memory_space<vmem>>) attributes {dimension_semantics = [#tpu.dimension_semantics<parallel>], iteration_bounds = array<i64: 1>, scalar_prefetch = 0 : i64, scratch_operands = 0 : i64, tpu.core_type = #tpu.core_type<tc>, window_params = [{transform_indices = @transform_0, window_bounds = array<i64: 256, 128>}, {pipeline_mode = #tpu.pipeline_mode<synchronous>, transform_indices = @transform_1, window_bounds = array<i64: 128, 128>}, {pipeline_mode = #tpu.pipeline_mode<synchronous>, transform_indices = @transform_2, window_bounds = array<i64: 1, 128>}, {pipeline_mode = #tpu.pipeline_mode<synchronous>, transform_indices = @transform_3, window_bounds = array<i64: 1, 128>}, {pipeline_mode = #tpu.pipeline_mode<synchronous>, transform_indices = @transform_4, window_bounds = array<i64: 1, 128>}, {transform_indices = @transform_5, window_bounds = array<i64: 256, 128>}]} {
    %c0 = arith.constant 0 : index
    %c0_0 = arith.constant 0 : index
    %0 = vector.load %arg1[%c0, %c0_0] : memref<256x128xbf16, #tpu.memory_space<vmem>>, vector<256x128xbf16>
    %c0_1 = arith.constant 0 : index
    %c0_2 = arith.constant 0 : index
    %1 = vector.load %arg2[%c0_1, %c0_2] : memref<128x128xbf16, #tpu.memory_space<vmem>>, vector<128x128xbf16>
    %cst = arith.constant dense<0.000000e+00> : vector<256x128xf32>
    %2 = tpu.matmul %0, %1, %cst {dimension_numbers = #tpu.dot_dimension_numbers<[1], [0], [0], [1], [0, 0, 1, 1], [], []>} : vector<256x128xbf16>, vector<128x128xbf16>, vector<256x128xf32> -> vector<256x128xf32>
    %c0_3 = arith.constant 0 : index
    %c0_4 = arith.constant 0 : index
    %3 = vector.load %arg3[%c0_3, %c0_4] : memref<1x128xf32, #tpu.memory_space<vmem>>, vector<1x128xf32>
    %c0_5 = arith.constant 0 : index
    %c0_6 = arith.constant 0 : index
    %4 = vector.load %arg4[%c0_5, %c0_6] : memref<1x128xf32, #tpu.memory_space<vmem>>, vector<1x128xf32>
    %c0_7 = arith.constant 0 : index
    %c0_8 = arith.constant 0 : index
    %5 = vector.load %arg5[%c0_7, %c0_8] : memref<1x128xf32, #tpu.memory_space<vmem>>, vector<1x128xf32>
    %6 = vector.broadcast %3 : vector<1x128xf32> to vector<256x128xf32>
    %7 = arith.addf %2, %6 : vector<256x128xf32>
    %8 = tpu.iota {dimensions = array<i32: 1>} : vector<256x128xi32>
    %c32_i32 = arith.constant 32 : i32
    %9 = vector.broadcast %c32_i32 : i32 to vector<256x128xi32>
    %10 = arith.cmpi slt, %8, %9 : vector<256x128xi32>
    %11 = arith.extui %10 : vector<256x128xi1> to vector<256x128xi32>
    %12 = arith.sitofp %11 : vector<256x128xi32> to vector<256x128xf32>
    %13 = arith.mulf %7, %12 : vector<256x128xf32>
    %cst_9 = arith.constant dense<0.000000e+00> : vector<256xf32>
    %14 = vector.multi_reduction <add>, %13, %cst_9 [1] : vector<256x128xf32> to vector<256xf32>
    %15 = vector.shape_cast %14 : vector<256xf32> to vector<256x1xf32>
    %cst_10 = arith.constant 3.125000e-02 : f32
    %16 = vector.broadcast %cst_10 : f32 to vector<256x1xf32>
    %17 = arith.mulf %15, %16 : vector<256x1xf32>
    %18 = vector.broadcast %17 : vector<256x1xf32> to vector<256x128xf32>
    %19 = arith.subf %7, %18 : vector<256x128xf32>
    %20 = arith.mulf %19, %12 : vector<256x128xf32>
    %21 = arith.mulf %20, %20 : vector<256x128xf32>
    %cst_11 = arith.constant dense<0.000000e+00> : vector<256xf32>
    %22 = vector.multi_reduction <add>, %21, %cst_11 [1] : vector<256x128xf32> to vector<256xf32>
    %23 = vector.shape_cast %22 : vector<256xf32> to vector<256x1xf32>
    %cst_12 = arith.constant 3.125000e-02 : f32
    %24 = vector.broadcast %cst_12 : f32 to vector<256x1xf32>
    %25 = arith.mulf %23, %24 : vector<256x1xf32>
    %26 = vector.broadcast %17 : vector<256x1xf32> to vector<256x128xf32>
    %27 = arith.subf %7, %26 : vector<256x128xf32>
    %cst_13 = arith.constant 9.99999997E-7 : f32
    %28 = vector.broadcast %cst_13 : f32 to vector<256x1xf32>
    %29 = arith.addf %25, %28 : vector<256x1xf32>
    %30 = math.rsqrt %29 : vector<256x1xf32>
    %31 = vector.broadcast %30 : vector<256x1xf32> to vector<256x128xf32>
    %32 = arith.mulf %27, %31 : vector<256x128xf32>
    %33 = vector.broadcast %4 : vector<1x128xf32> to vector<256x128xf32>
    %34 = arith.mulf %32, %33 : vector<256x128xf32>
    %35 = vector.broadcast %5 : vector<1x128xf32> to vector<256x128xf32>
    %36 = arith.addf %34, %35 : vector<256x128xf32>
    %c0_14 = arith.constant 0 : index
    %c0_15 = arith.constant 0 : index
    %37 = vector.load %arg6[%c0_14, %c0_15] : memref<256x128xf32, #tpu.memory_space<vmem>>, vector<256x128xf32>
    tpu.vector_store %arg6[%c0_14, %c0_15], %36 {strides = array<i32>} : memref<256x128xf32, #tpu.memory_space<vmem>>, vector<256x128xf32>,
    return
  }
  func.func @transform_0(%arg0: i32) -> (i32, i32) {
    %c0_i32 = arith.constant 0 : i32
    %c0_i32_0 = arith.constant 0 : i32
    return %arg0, %c0_i32 : i32, i32
  }
  func.func @transform_1(%arg0: i32) -> (i32, i32) {
    %c0_i32 = arith.constant 0 : i32
    %c0_i32_0 = arith.constant 0 : i32
    %c0_i32_1 = arith.constant 0 : i32
    return %c0_i32, %c0_i32_0 : i32, i32
  }
  func.func @transform_2(%arg0: i32) -> (i32, i32) {
    %c0_i32 = arith.constant 0 : i32
    %c0_i32_0 = arith.constant 0 : i32
    %c0_i32_1 = arith.constant 0 : i32
    return %c0_i32, %c0_i32_0 : i32, i32
  }
  func.func @transform_3(%arg0: i32) -> (i32, i32) {
    %c0_i32 = arith.constant 0 : i32
    %c0_i32_0 = arith.constant 0 : i32
    %c0_i32_1 = arith.constant 0 : i32
    return %c0_i32, %c0_i32_0 : i32, i32
  }
  func.func @transform_4(%arg0: i32) -> (i32, i32) {
    %c0_i32 = arith.constant 0 : i32
    %c0_i32_0 = arith.constant 0 : i32
    %c0_i32_1 = arith.constant 0 : i32
    return %c0_i32, %c0_i32_0 : i32, i32
  }
  func.func @transform_5(%arg0: i32) -> (i32, i32) {
    %c0_i32 = arith.constant 0 : i32
    %c0_i32_0 = arith.constant 0 : i32
    return %arg0, %c0_i32 : i32, i32
  }
}

</mosaic_0001>

<bundles_post_ra>
// kernel: pallas_matmul.1
= control target key start
LH: loop header
LB: loop body
LE: loop exit
PB: predicated region body
PF: predicated region fallthrough
CT: control target
= control target key end

     0   :  { %10 = vsyncpa [#allocation3], 0  ;;  %s1717_s0 = inlined_call_operand.hbm [shape: bf16[256,128], index: 0, kind: input, shape index: {}]   ;;  %s1718_s1 = inlined_call_operand.hbm [shape: bf16[128,128], index: 1, kind: input, shape index: {}]   ;;  %s1719_s2 = inlined_call_operand.vmem [shape: f32[1,128], index: 2, kind: input, shape index: {}]   ;;  %s1720_s3 = inlined_call_operand.vmem [shape: f32[1,128], index: 3, kind: input, shape index: {}]   ;;  %s1721_s4 = inlined_call_operand.vmem [shape: f32[1,128], index: 4, kind: input, shape index: {}]   ;;  %s1722_s5 = inlined_call_operand.hbm [shape: f32[256,128], index: 5, kind: output, shape index: {}]  }
   0x1   :  { %11 = vsyncpa [#allocation6], 0 }
   0x2   :  { %12 = vsyncpa [#allocation4], 0  ;;  %s1237_s18 = smov [#allocation2]  }
   0x3   :  { %s18_s19 = sshll.u32 %s1237_s18, 4  ;;  %s19_s19 = int_to_ptr.vmem [resolvable:$true] %s18_s19 }
   0x4   :  { %s1179_s20 = scalar_lea.vmem %s19_s19, 2048  ;;  %p1184_p1 = scmp.lt.s32.totalorder %s19_s19, %s19_s19 }
   0x5   :  { %p1180_p0 = scmp.ne.s32.totalorder %s19_s19, %s1179_s20  ;;  %p1185_p2 = scmp.lt.s32.totalorder %s1179_s20, %s1179_s20 }
   0x7   :  { %p1186_p3 = por %p1185_p2, %p1184_p1 }
   0x9   :  { %p1187_p4 = pnand %p1186_p3, %p1180_p0 }
   0xb   :  { %1190 = shalt.err (!%p1187_p4)
}
   0xc   :  { %s1238_s21 = smov 64   ;;  %s1239_s22 = smov 4  }
   0xd   :  { %24 = dma.hbm_to_vmem [thread:$0]  %s1717_s0, 2048, %s19_s19, [#allocation3], %s1238_s21, %s1238_s21, %s1239_s22  }
   0xe   :  { %s1240_s25 = smov [#allocation5]  }
   0xf   :  { %s30_s26 = sshll.u32 %s1240_s25, 4  ;;  %s31_s26 = int_to_ptr.vmem [resolvable:$true] %s30_s26 }
  0x10   :  { %s1199_s27 = scalar_lea.vmem %s31_s26, 1024  ;;  %p1204_p6 = scmp.lt.s32.totalorder %s31_s26, %s31_s26 }
  0x11   :  { %p1200_p5 = scmp.ne.s32.totalorder %s31_s26, %s1199_s27  ;;  %p1205_p7 = scmp.lt.s32.totalorder %s1199_s27, %s1199_s27 }
  0x13   :  { %p1206_p8 = por %p1205_p7, %p1204_p6 }
  0x15   :  { %p1207_p9 = pnand %p1206_p8, %p1200_p5 }
  0x17   :  { %1210 = shalt.err (!%p1207_p9)
}
  0x18   :  { %36 = dma.hbm_to_vmem [thread:$0]  %s1718_s1, 1024, %s31_s26, [#allocation6], %s1238_s21, %s1238_s21, %s1239_s22  }
  0x19   :  { %1231 = dma.done.wait [#allocation3], 2048  }
  0x1a   :  { %1232 = vsyncadd [#allocation3], 4294965248 }
  0x1b   :  { %1233 = dma.done.wait [#allocation6], 1024  }
  0x1c   :  { %1234 = vsyncadd [#allocation6], 4294966272  ;;  %v1083_v0 = vld [vmem:[#allocation5 + $0x38] sm:$0xff]   ;;  %v1084_v1 = vld [vmem:[#allocation5 + $0x30] sm:$0xff]   ;;  %v412_v24 = vlaneseq  ;;  %v1241_v29 = vmov 0.0  }
  0x1d   :  { %1011 = vmatprep.subr.bf16.mxu0 %v1083_v0  ;;  %1059 = vmatprep.subr.bf16.mxu1 %v1083_v0  ;;  %v1085_v2 = vld [vmem:[#allocation5 + $0x28] sm:$0xff]   ;;  %v1086_v3 = vld [vmem:[#allocation5 + $0x20] sm:$0xff]   ;;  %v1087_v6 = vld [vmem:[#allocation5 + $0x18] sm:$0xff]  }
  0x1e   :  { %1012 = vmatpush3.bf16.msra.mxu0 %v1083_v0  ;;  %1067 = vmatpush3.bf16.msra.mxu1 %v1083_v0  ;;  %v1091_v4 = vld [vmem:[#allocation2] sm:$0xff]   ;;  %v1088_v7 = vld [vmem:[#allocation5 + $0x10] sm:$0xff]   ;;  %v1089_v8 = vld [vmem:[#allocation5 + $0x8] sm:$0xff]   ;;  %v413_v25 = vand.u32 127, %v412_v24 }
  0x1f   :  { %1013 = vmatprep.subr.bf16.mxu0 %v1084_v1  ;;  %1060 = vmatprep.subr.bf16.mxu1 %v1084_v1  ;;  %v1092_v5 = vld [vmem:[#allocation2 + $0x40] sm:$0xff]   ;;  %v1093_v10 = vld [vmem:[#allocation2 + $0x8] sm:$0xff]   ;;  %v1095_v12 = vld [vmem:[#allocation2 + $0x10] sm:$0xff]  }
  0x20   :  { %1027 = vmatprep.mubr.bf16.mxu0 %v1091_v4  ;;  %1043 = vmatprep.mubr.bf16.mxu1 %v1092_v5  ;;  %v1090_v9 = vld [vmem:[#allocation5] sm:$0xff]   ;;  %v1094_v11 = vld [vmem:[#allocation2 + $0x48] sm:$0xff]   ;;  %v1097_v13 = vld [vmem:[#allocation2 + $0x50] sm:$0xff]   ;;  %vm414_vm0 = vcmp.lt.s32.totalorder %v413_v25, 32 }
  0x21   :  { %v1096_v14 = vld [vmem:[#allocation2 + $0x18] sm:$0xff]   ;;  %v1099_v16 = vld [vmem:[#allocation2 + $0x20] sm:$0xff]   ;;  %v1100_v18 = vld [vmem:[#allocation2 + $0x28] sm:$0xff]   ;;  %v1286_v30 = vsel %vm414_vm0, 1.0, %v1241_v29 }
  0x22   :  { %1014 = vmatpush3.bf16.msra.mxu0 %v1084_v1  ;;  %1068 = vmatpush3.bf16.msra.mxu1 %v1084_v1  ;;  %v1098_v15 = vld [vmem:[#allocation2 + $0x58] sm:$0xff]   ;;  %v1101_v17 = vld [vmem:[#allocation2 + $0x60] sm:$0xff]   ;;  %v1102_v19 = vld [vmem:[#allocation2 + $0x68] sm:$0xff]  }
  0x23   :  { %1015 = vmatprep.subr.bf16.mxu0 %v1085_v2  ;;  %1061 = vmatprep.subr.bf16.mxu1 %v1085_v2  ;;  %v1103_v20 = vld [vmem:[#allocation2 + $0x30] sm:$0xff]   ;;  %v1104_v22 = vld [vmem:[#allocation2 + $0x38] sm:$0xff]   ;;  %v1284_v26 = vld [vmem:[%s1719_s2] ss:$0 sm:$0xff] }
  0x24   :  { %v1105_v21 = vld [vmem:[#allocation2 + $0x70] sm:$0xff]   ;;  %v1106_v23 = vld [vmem:[#allocation2 + $0x78] sm:$0xff]  }
  0x26   :  { %1016 = vmatpush3.bf16.msra.mxu0 %v1085_v2  ;;  %1069 = vmatpush3.bf16.msra.mxu1 %v1085_v2 }
  0x27   :  { %1017 = vmatprep.subr.bf16.mxu0 %v1086_v3  ;;  %1062 = vmatprep.subr.bf16.mxu1 %v1086_v3 }
  0x2a   :  { %1018 = vmatpush3.bf16.msra.mxu0 %v1086_v3  ;;  %1070 = vmatpush3.bf16.msra.mxu1 %v1086_v3 }
  0x2b   :  { %1019 = vmatprep.subr.bf16.mxu0 %v1087_v6  ;;  %1063 = vmatprep.subr.bf16.mxu1 %v1087_v6 }
  0x2e   :  { %1020 = vmatpush3.bf16.msra.mxu0 %v1087_v6  ;;  %1071 = vmatpush3.bf16.msra.mxu1 %v1087_v6 }
  0x2f   :  { %1021 = vmatprep.subr.bf16.mxu0 %v1088_v7  ;;  %1064 = vmatprep.subr.bf16.mxu1 %v1088_v7 }
  0x32   :  { %1022 = vmatpush3.bf16.msra.mxu0 %v1088_v7  ;;  %1072 = vmatpush3.bf16.msra.mxu1 %v1088_v7 }
  0x33   :  { %1023 = vmatprep.subr.bf16.mxu0 %v1089_v8  ;;  %1065 = vmatprep.subr.bf16.mxu1 %v1089_v8 }
  0x36   :  { %1024 = vmatpush3.bf16.msra.mxu0 %v1089_v8  ;;  %1073 = vmatpush3.bf16.msra.mxu1 %v1089_v8 }
  0x37   :  { %1025 = vmatprep.subr.bf16.mxu0 %v1090_v9  ;;  %1066 = vmatprep.subr.bf16.mxu1 %v1090_v9 }
  0x3a   :  { %1026 = vmatpush3.bf16.msra.mxu0 %v1090_v9  ;;  %1074 = vmatpush3.bf16.msra.mxu1 %v1090_v9 }
  0x3d   :  { %1028 = vmatmul.mubr.bf16.vlgmr.msra.gmra.mxu0 %v1093_v10  ;;  %1044 = vmatmul.mubr.bf16.vlgmr.msra.gmra.mxu1 %v1094_v11 }
  0x3e   :  { %1031 = vmatprep.mubr.bf16.mxu0 %v1095_v12  ;;  %1047 = vmatprep.mubr.bf16.mxu1 %v1097_v13 }
  0x45   :  { %1032 = vmatmul.mubr.bf16.gmra.mxu0 %v1096_v14  ;;  %1048 = vmatmul.mubr.bf16.gmra.mxu1 %v1098_v15 }
  0x46   :  { %1035 = vmatprep.mubr.bf16.mxu0 %v1099_v16  ;;  %1051 = vmatprep.mubr.bf16.mxu1 %v1101_v17 }
  0x4d   :  { %1036 = vmatmul.mubr.bf16.gmra.mxu0 %v1100_v18  ;;  %1052 = vmatmul.mubr.bf16.gmra.mxu1 %v1102_v19 }
  0x4e   :  { %1039 = vmatprep.mubr.bf16.mxu0 %v1103_v20  ;;  %1055 = vmatprep.mubr.bf16.mxu1 %v1105_v21 }
  0x55   :  { %1040 = vmatmul.mubr.bf16.gmra.mxu0 %v1104_v22  ;;  %1056 = vmatmul.mubr.bf16.gmra.mxu1 %v1106_v23 }
  0xfd   :  { %v1029_v27 = vpop.f32.mrf.mxu0  ;;  %v1045_v28 = vpop.f32.mrf.mxu1 }
  0xfe   :  { %v1289_v31 = vadd.f32 %v1029_v27, %v1284_v26  ;;  %v1292_v32 = vadd.f32 %v1045_v28, %v1284_v26 }
  0xff   :  { %v285_v33 = vpop.f32.mrf.mxu0  ;;  %v349_v34 = vpop.f32.mrf.mxu1 }
 0x100   :  { %v1295_v35 = vadd.f32 %v1284_v26, %v285_v33  ;;  %v435_v36 = vmul.f32 %v1286_v30, %v1292_v32  ;;  %v419_v37 = vmul.f32 %v1286_v30, %v1289_v31  ;;  %v1305_v43 = vadd.f32 %v1284_v26, %v349_v34 }
 0x101   :  { %v1030_v38 = vpop.f32.mrf.mxu0  ;;  %v1046_v39 = vpop.f32.mrf.mxu1 }
 0x102   :  { %v1302_v40 = vadd.f32 %v1030_v38, %v1284_v26  ;;  %485 = vadd.xlane.f32.xlu0 %v435_v36  ;;  %453 = vadd.xlane.f32.xlu1 %v419_v37  ;;  %v1308_v44 = vadd.f32 %v1046_v39, %v1284_v26  ;;  %v417_v46 = vmul.f32 %v1286_v30, %v1295_v35 }
 0x103   :  { %v288_v41 = vpop.f32.mrf.mxu0  ;;  %v352_v42 = vpop.f32.mrf.mxu1  ;;  %v433_v53 = vmul.f32 %v1286_v30, %v1305_v43 }
 0x104   :  { %v420_v45 = vmul.f32 %v1286_v30, %v1302_v40  ;;  %v1315_v50 = vadd.f32 %v1284_v26, %v288_v41  ;;  %v1318_v51 = vadd.f32 %v1284_v26, %v352_v42  ;;  %v436_v52 = vmul.f32 %v1286_v30, %v1308_v44 }
 0x105   :  { %v1033_v47 = vpop.f32.mrf.mxu0  ;;  %v1049_v48 = vpop.f32.mrf.mxu1 }
 0x106   :  { %455 = vadd.xlane.f32.xlu1 %v420_v45  ;;  %449 = vadd.xlane.f32.xlu0 %v417_v46  ;;  %v1325_v56 = vadd.f32 %v1033_v47, %v1284_v26  ;;  %v434_v58 = vmul.f32 %v1286_v30, %v1318_v51  ;;  %v418_v59 = vmul.f32 %v1286_v30, %v1315_v50 }
 0x107   :  { %v301_v49 = vpop.f32.mrf.mxu0  ;;  %v365_v55 = vpop.f32.mrf.mxu1  ;;  %v1335_v60 = vadd.f32 %v1049_v48, %v1284_v26 }
 0x108   :  { %v423_v0 = vmul.f32 %v1286_v30, %v1325_v56  ;;  %v1349_v6 = vadd.f32 %v1284_v26, %v301_v49  ;;  %v1355_v10 = vadd.f32 %v1284_v26, %v365_v55 }
 0x109   :  { %v1034_v54 = vpop.f32.mrf.mxu0  ;;  %v1050_v61 = vpop.f32.mrf.mxu1  ;;  %v439_v4 = vmul.f32 %v1286_v30, %v1335_v60 }
 0x10a   :  { %487 = vadd.xlane.f32.xlu1 %v436_v52  ;;  %481 = vadd.xlane.f32.xlu0 %v433_v53  ;;  %v1328_v57 = vadd.f32 %v1034_v54, %v1284_v26  ;;  %v1338_v62 = vadd.f32 %v1050_v61, %v1284_v26  ;;  %v421_v13 = vmul.f32 %v1286_v30, %v1349_v6 }
 0x10b   :  { %v304_v1 = vpop.f32.mrf.mxu0  ;;  %v368_v5 = vpop.f32.mrf.mxu1  ;;  %v437_v19 = vmul.f32 %v1286_v30, %v1355_v10 }
 0x10c   :  { %v424_v63 = vmul.f32 %v1286_v30, %v1328_v57  ;;  %v440_v3 = vmul.f32 %v1286_v30, %v1338_v62  ;;  %v1352_v7 = vadd.f32 %v1284_v26, %v304_v1  ;;  %v1358_v11 = vadd.f32 %v1284_v26, %v368_v5 }
 0x10d   :  { %v1037_v2 = vpop.f32.mrf.mxu0  ;;  %v1053_v9 = vpop.f32.mrf.mxu1 }
 0x10e   :  { %483 = vadd.xlane.f32.xlu1 %v434_v58  ;;  %451 = vadd.xlane.f32.xlu0 %v418_v59  ;;  %v422_v12 = vmul.f32 %v1286_v30, %v1352_v7  ;;  %v1365_v16 = vadd.f32 %v1037_v2, %v1284_v26  ;;  %v438_v18 = vmul.f32 %v1286_v30, %v1358_v11 }
 0x10f   :  { %v317_v8 = vpop.f32.mrf.mxu0  ;;  %v381_v15 = vpop.f32.mrf.mxu1  ;;  %v1375_v20 = vadd.f32 %v1053_v9, %v1284_v26 }
 0x110   :  { %v427_v24 = vmul.f32 %v1286_v30, %v1365_v16  ;;  %v1389_v34 = vadd.f32 %v1284_v26, %v317_v8  ;;  %v1395_v39 = vadd.f32 %v1284_v26, %v381_v15 }
 0x111   :  { %v1038_v14 = vpop.f32.mrf.mxu0  ;;  %v1054_v21 = vpop.f32.mrf.mxu1  ;;  %v443_v29 = vmul.f32 %v1286_v30, %v1375_v20 }
 0x112   :  { %463 = vadd.xlane.f32.xlu1 %v424_v63  ;;  %461 = vadd.xlane.f32.xlu0 %v423_v0  ;;  %v1368_v17 = vadd.f32 %v1038_v14, %v1284_v26  ;;  %v1378_v22 = vadd.f32 %v1054_v21, %v1284_v26  ;;  %v425_v45 = vmul.f32 %v1286_v30, %v1389_v34 }
 0x113   :  { %v320_v25 = vpop.f32.mrf.mxu0  ;;  %v384_v33 = vpop.f32.mrf.mxu1  ;;  %v441_v53 = vmul.f32 %v1286_v30, %v1395_v39 }
 0x114   :  { %v428_v23 = vmul.f32 %v1286_v30, %v1368_v17  ;;  %v444_v28 = vmul.f32 %v1286_v30, %v1378_v22  ;;  %v1392_v36 = vadd.f32 %v1284_v26, %v320_v25  ;;  %v1398_v41 = vadd.f32 %v1284_v26, %v384_v33 }
 0x115   :  { %v1041_v27 = vpop.f32.mrf.mxu0  ;;  %v1057_v38 = vpop.f32.mrf.mxu1 }
 0x116   :  { %495 = vadd.xlane.f32.xlu1 %v440_v3  ;;  %493 = vadd.xlane.f32.xlu0 %v439_v4  ;;  %v426_v42 = vmul.f32 %v1286_v30, %v1392_v36  ;;  %v1405_v48 = vadd.f32 %v1041_v27, %v1284_v26  ;;  %v442_v52 = vmul.f32 %v1286_v30, %v1398_v41 }
 0x117   :  { %v333_v37 = vpop.f32.mrf.mxu0  ;;  %v397_v47 = vpop.f32.mrf.mxu1  ;;  %v1435_v5 = vadd.f32 %v1057_v38, %v1284_v26 }
 0x118   :  { %v431_v59 = vmul.f32 %v1286_v30, %v1405_v48  ;;  %v1419_v61 = vadd.f32 %v1284_v26, %v333_v37  ;;  %v1425_v1 = vadd.f32 %v1284_v26, %v397_v47 }
 0x119   :  { %v1042_v46 = vpop.f32.mrf.mxu0  ;;  %v1058_v55 = vpop.f32.mrf.mxu1  ;;  %v447_v14 = vmul.f32 %v1286_v30, %v1435_v5 }
 0x11a   :  { %459 = vadd.xlane.f32.xlu1 %v422_v12  ;;  %457 = vadd.xlane.f32.xlu0 %v421_v13  ;;  %v1408_v49 = vadd.f32 %v1042_v46, %v1284_v26  ;;  %v429_v4 = vmul.f32 %v1286_v30, %v1419_v61  ;;  %v1438_v8 = vadd.f32 %v1058_v55, %v1284_v26 }
 0x11b   :  { %v336_v54 = vpop.f32.mrf.mxu0  ;;  %v400_v0 = vpop.f32.mrf.mxu1  ;;  %v445_v12 = vmul.f32 %v1286_v30, %v1425_v1 }
 0x11c   :  { %v432_v58 = vmul.f32 %v1286_v30, %v1408_v49  ;;  %v1422_v63 = vadd.f32 %v1284_v26, %v336_v54  ;;  %v1428_v2 = vadd.f32 %v1284_v26, %v400_v0  ;;  %v448_v13 = vmul.f32 %v1286_v30, %v1438_v8 }
 0x11e   :  { %491 = vadd.xlane.f32.xlu1 %v438_v18  ;;  %489 = vadd.xlane.f32.xlu0 %v437_v19  ;;  %v430_v3 = vmul.f32 %v1286_v30, %v1422_v63  ;;  %v446_v9 = vmul.f32 %v1286_v30, %v1428_v2 }
 0x122   :  { %471 = vadd.xlane.f32.xlu1 %v428_v23  ;;  %469 = vadd.xlane.f32.xlu0 %v427_v24 }
 0x126   :  { %503 = vadd.xlane.f32.xlu1 %v444_v28  ;;  %501 = vadd.xlane.f32.xlu0 %v443_v29 }
 0x12a   :  { %467 = vadd.xlane.f32.xlu1 %v426_v42  ;;  %465 = vadd.xlane.f32.xlu0 %v425_v45 }
 0x12e   :  { %499 = vadd.xlane.f32.xlu1 %v442_v52  ;;  %497 = vadd.xlane.f32.xlu0 %v441_v53 }
 0x132   :  { %479 = vadd.xlane.f32.xlu1 %v432_v58  ;;  %477 = vadd.xlane.f32.xlu0 %v431_v59 }
 0x136   :  { %475 = vadd.xlane.f32.xlu1 %v430_v3  ;;  %473 = vadd.xlane.f32.xlu0 %v429_v4 }
 0x13a   :  { %507 = vadd.xlane.f32.xlu1 %v446_v9  ;;  %505 = vadd.xlane.f32.xlu0 %v445_v12 }
 0x13e   :  { %511 = vadd.xlane.f32.xlu1 %v448_v13  ;;  %509 = vadd.xlane.f32.xlu0 %v447_v14 }
 0x18b   :  { %v486_v15 = vpop.xlane.xlu0 %485  ;;  %v454_v18 = vpop.xlane.xlu1 %453 }
 0x18c   :  { %v531_v26 = vmul.f32 0.03125, %v486_v15  ;;  %v515_v19 = vmul.f32 0.03125, %v454_v18 }
 0x18e   :  { %v1449_v21 = vsub.f32 %v1292_v32, %v531_v26  ;;  %v1452_v23 = vsub.f32 %v1289_v31, %v515_v19 }
 0x18f   :  { %v456_v24 = vpop.xlane.xlu1 %455  ;;  %v450_v25 = vpop.xlane.xlu0 %449 }
 0x190   :  { %v516_v27 = vmul.f32 0.03125, %v456_v24  ;;  %v513_v28 = vmul.f32 0.03125, %v450_v25  ;;  %v579_v29 = vmul.f32 %v1286_v30, %v1452_v23  ;;  %v595_v32 = vmul.f32 %v1286_v30, %v1449_v21 }
 0x192   :  { %v1457_v33 = vsub.f32 %v1302_v40, %v516_v27  ;;  %v1460_v37 = vsub.f32 %v1295_v35, %v513_v28  ;;  %v611_v38 = vmul.f32 %v579_v29, %v579_v29  ;;  %v627_v54 = vmul.f32 %v595_v32, %v595_v32 }
 0x193   :  { %v488_v42 = vpop.xlane.xlu1 %487  ;;  %v482_v31 = vpop.xlane.xlu0 %481 }
 0x194   :  { %v532_v45 = vmul.f32 0.03125, %v488_v42  ;;  %v529_v46 = vmul.f32 0.03125, %v482_v31  ;;  %645 = vadd.xlane.f32.xlu0 %v611_v38  ;;  %v580_v47 = vmul.f32 %v1286_v30, %v1457_v33  ;;  %v577_v52 = vmul.f32 %v1286_v30, %v1460_v37 }
 0x196   :  { %v1469_v40 = vsub.f32 %v1308_v44, %v532_v45  ;;  %v1472_v35 = vsub.f32 %v1305_v43, %v529_v46  ;;  %v612_v53 = vmul.f32 %v580_v47, %v580_v47  ;;  %v609_v4 = vmul.f32 %v577_v52, %v577_v52 }
 0x197   :  { %v484_v55 = vpop.xlane.xlu1 %483  ;;  %v452_v58 = vpop.xlane.xlu0 %451 }
 0x198   :  { %v530_v59 = vmul.f32 0.03125, %v484_v55  ;;  %v514_v0 = vmul.f32 0.03125, %v452_v58  ;;  %647 = vadd.xlane.f32.xlu1 %v612_v53  ;;  %677 = vadd.xlane.f32.xlu0 %v627_v54  ;;  %v596_v3 = vmul.f32 %v1286_v30, %v1469_v40  ;;  %v593_v12 = vmul.f32 %v1286_v30, %v1472_v35 }
 0x19a   :  { %v1477_v9 = vsub.f32 %v1318_v51, %v530_v59  ;;  %v1480_v44 = vsub.f32 %v1315_v50, %v514_v0  ;;  %v628_v43 = vmul.f32 %v596_v3, %v596_v3  ;;  %v625_v24 = vmul.f32 %v593_v12, %v593_v12 }
 0x19b   :  { %v464_v13 = vpop.xlane.xlu1 %463  ;;  %v462_v14 = vpop.xlane.xlu0 %461 }
 0x19c   :  { %v520_v15 = vmul.f32 0.03125, %v464_v13  ;;  %v519_v18 = vmul.f32 0.03125, %v462_v14  ;;  %679 = vadd.xlane.f32.xlu1 %v628_v43  ;;  %641 = vadd.xlane.f32.xlu0 %v609_v4  ;;  %v578_v26 = vmul.f32 %v1286_v30, %v1480_v44  ;;  %v594_v51 = vmul.f32 %v1286_v30, %v1477_v9 }
 0x19e   :  { %v1489_v19 = vsub.f32 %v1328_v57, %v520_v15  ;;  %v1492_v50 = vsub.f32 %v1325_v56, %v519_v18  ;;  %v610_v25 = vmul.f32 %v578_v26, %v578_v26  ;;  %v626_v42 = vmul.f32 %v594_v51, %v594_v51 }
 0x19f   :  { %v496_v27 = vpop.xlane.xlu1 %495  ;;  %v494_v28 = vpop.xlane.xlu0 %493 }
 0x1a0   :  { %v536_v29 = vmul.f32 0.03125, %v496_v27  ;;  %v535_v38 = vmul.f32 0.03125, %v494_v28  ;;  %673 = vadd.xlane.f32.xlu0 %v625_v24  ;;  %643 = vadd.xlane.f32.xlu1 %v610_v25  ;;  %v583_v32 = vmul.f32 %v1286_v30, %v1492_v50  ;;  %v584_v45 = vmul.f32 %v1286_v30, %v1489_v19 }
 0x1a2   :  { %v1497_v31 = vsub.f32 %v1338_v62, %v536_v29  ;;  %v1500_v57 = vsub.f32 %v1335_v60, %v535_v38  ;;  %v615_v56 = vmul.f32 %v583_v32, %v583_v32  ;;  %v616_v58 = vmul.f32 %v584_v45, %v584_v45 }
 0x1a3   :  { %v460_v46 = vpop.xlane.xlu1 %459  ;;  %v458_v47 = vpop.xlane.xlu0 %457 }
 0x1a4   :  { %v518_v52 = vmul.f32 0.03125, %v460_v46  ;;  %v517_v53 = vmul.f32 0.03125, %v458_v47  ;;  %675 = vadd.xlane.f32.xlu1 %v626_v42  ;;  %653 = vadd.xlane.f32.xlu0 %v615_v56  ;;  %v599_v54 = vmul.f32 %v1286_v30, %v1500_v57  ;;  %v600_v62 = vmul.f32 %v1286_v30, %v1497_v31 }
 0x1a6   :  { %v1509_v55 = vsub.f32 %v1352_v7, %v518_v52  ;;  %v1512_v60 = vsub.f32 %v1349_v6, %v517_v53  ;;  %v631_v59 = vmul.f32 %v599_v54, %v599_v54  ;;  %v632_v13 = vmul.f32 %v600_v62, %v600_v62 }
 0x1a7   :  { %v492_v0 = vpop.xlane.xlu1 %491  ;;  %v490_v3 = vpop.xlane.xlu0 %489 }
 0x1a8   :  { %v534_v4 = vmul.f32 0.03125, %v492_v0  ;;  %v533_v43 = vmul.f32 0.03125, %v490_v3  ;;  %655 = vadd.xlane.f32.xlu1 %v616_v58  ;;  %685 = vadd.xlane.f32.xlu0 %v631_v59  ;;  %v581_v12 = vmul.f32 %v1286_v30, %v1512_v60  ;;  %v582_v15 = vmul.f32 %v1286_v30, %v1509_v55 }
 0x1aa   :  { %v1517_v14 = vsub.f32 %v1358_v11, %v534_v4  ;;  %v1520_v7 = vsub.f32 %v1355_v10, %v533_v43  ;;  %v613_v6 = vmul.f32 %v581_v12, %v581_v12  ;;  %v614_v28 = vmul.f32 %v582_v15, %v582_v15 }
 0x1ab   :  { %v472_v18 = vpop.xlane.xlu1 %471  ;;  %v470_v26 = vpop.xlane.xlu0 %469 }
 0x1ac   :  { %v524_v51 = vmul.f32 0.03125, %v472_v18  ;;  %v523_v24 = vmul.f32 0.03125, %v470_v26  ;;  %687 = vadd.xlane.f32.xlu1 %v632_v13  ;;  %649 = vadd.xlane.f32.xlu0 %v613_v6  ;;  %v597_v25 = vmul.f32 %v1286_v30, %v1520_v7  ;;  %v598_v11 = vmul.f32 %v1286_v30, %v1517_v14 }
 0x1ae   :  { %v1529_v27 = vsub.f32 %v1368_v17, %v524_v51  ;;  %v1532_v10 = vsub.f32 %v1365_v16, %v523_v24  ;;  %v629_v29 = vmul.f32 %v597_v25, %v597_v25  ;;  %v630_v46 = vmul.f32 %v598_v11, %v598_v11 }
 0x1af   :  { %v504_v38 = vpop.xlane.xlu1 %503  ;;  %v502_v32 = vpop.xlane.xlu0 %501 }
 0x1b0   :  { %v540_v42 = vmul.f32 0.03125, %v504_v38  ;;  %v539_v56 = vmul.f32 0.03125, %v502_v32  ;;  %651 = vadd.xlane.f32.xlu1 %v614_v28  ;;  %681 = vadd.xlane.f32.xlu0 %v629_v29  ;;  %v587_v45 = vmul.f32 %v1286_v30, %v1532_v10  ;;  %v588_v52 = vmul.f32 %v1286_v30, %v1529_v27 }
 0x1b2   :  { %v1537_v47 = vsub.f32 %v1378_v22, %v540_v42  ;;  %v1540_v17 = vsub.f32 %v1375_v20, %v539_v56  ;;  %v619_v16 = vmul.f32 %v587_v45, %v587_v45  ;;  %v620_v3 = vmul.f32 %v588_v52, %v588_v52 }
 0x1b3   :  { %v468_v53 = vpop.xlane.xlu1 %467  ;;  %v466_v54 = vpop.xlane.xlu0 %465 }
 0x1b4   :  { %v522_v62 = vmul.f32 0.03125, %v468_v53  ;;  %v521_v58 = vmul.f32 0.03125, %v466_v54  ;;  %683 = vadd.xlane.f32.xlu1 %v630_v46  ;;  %661 = vadd.xlane.f32.xlu0 %v619_v16  ;;  %v603_v59 = vmul.f32 %v1286_v30, %v1540_v17  ;;  %v604_v22 = vmul.f32 %v1286_v30, %v1537_v47 }
 0x1b6   :  { %v1549_v0 = vsub.f32 %v1392_v36, %v522_v62  ;;  %v1552_v20 = vsub.f32 %v1389_v34, %v521_v58  ;;  %v635_v4 = vmul.f32 %v603_v59, %v603_v59  ;;  %v636_v18 = vmul.f32 %v604_v22, %v604_v22 }
 0x1b7   :  { %v500_v43 = vpop.xlane.xlu1 %499  ;;  %v498_v12 = vpop.xlane.xlu0 %497 }
 0x1b8   :  { %v538_v13 = vmul.f32 0.03125, %v500_v43  ;;  %v537_v6 = vmul.f32 0.03125, %v498_v12  ;;  %663 = vadd.xlane.f32.xlu1 %v620_v3  ;;  %693 = vadd.xlane.f32.xlu0 %v635_v4  ;;  %v585_v15 = vmul.f32 %v1286_v30, %v1552_v20  ;;  %v586_v51 = vmul.f32 %v1286_v30, %v1549_v0 }
 0x1ba   :  { %v1557_v26 = vsub.f32 %v1398_v41, %v538_v13  ;;  %v1560_v36 = vsub.f32 %v1395_v39, %v537_v6  ;;  %v617_v34 = vmul.f32 %v585_v15, %v585_v15  ;;  %v618_v32 = vmul.f32 %v586_v51, %v586_v51 }
 0x1bb   :  { %v480_v24 = vpop.xlane.xlu1 %479  ;;  %v478_v25 = vpop.xlane.xlu0 %477 }
 0x1bc   :  { %v528_v11 = vmul.f32 0.03125, %v480_v24  ;;  %v527_v28 = vmul.f32 0.03125, %v478_v25  ;;  %695 = vadd.xlane.f32.xlu1 %v636_v18  ;;  %657 = vadd.xlane.f32.xlu0 %v617_v34  ;;  %v601_v29 = vmul.f32 %v1286_v30, %v1560_v36  ;;  %v602_v41 = vmul.f32 %v1286_v30, %v1557_v26 }
 0x1be   :  { %v1569_v38 = vsub.f32 %v1408_v49, %v528_v11  ;;  %v1572_v39 = vsub.f32 %v1405_v48, %v527_v28  ;;  %v633_v42 = vmul.f32 %v601_v29, %v601_v29  ;;  %v634_v53 = vmul.f32 %v602_v41, %v602_v41 }
 0x1bf   :  { %v476_v56 = vpop.xlane.xlu1 %475  ;;  %v474_v45 = vpop.xlane.xlu0 %473 }
 0x1c0   :  { %v526_v46 = vmul.f32 0.03125, %v476_v56  ;;  %v525_v16 = vmul.f32 0.03125, %v474_v45  ;;  %659 = vadd.xlane.f32.xlu1 %v618_v32  ;;  %689 = vadd.xlane.f32.xlu0 %v633_v42  ;;  %v591_v52 = vmul.f32 %v1286_v30, %v1572_v39  ;;  %v592_v62 = vmul.f32 %v1286_v30, %v1569_v38 }
 0x1c2   :  { %v1577_v54 = vsub.f32 %v1422_v63, %v526_v46  ;;  %v1580_v49 = vsub.f32 %v1419_v61, %v525_v16  ;;  %v623_v48 = vmul.f32 %v591_v52, %v591_v52  ;;  %v624_v12 = vmul.f32 %v592_v62, %v592_v62 }
 0x1c3   :  { %v508_v58 = vpop.xlane.xlu1 %507  ;;  %v506_v59 = vpop.xlane.xlu0 %505 }
 0x1c4   :  { %v542_v22 = vmul.f32 0.03125, %v508_v58  ;;  %v541_v3 = vmul.f32 0.03125, %v506_v59  ;;  %691 = vadd.xlane.f32.xlu1 %v634_v53  ;;  %669 = vadd.xlane.f32.xlu0 %v623_v48  ;;  %v589_v4 = vmul.f32 %v1286_v30, %v1580_v49  ;;  %v590_v63 = vmul.f32 %v1286_v30, %v1577_v54 }
 0x1c6   :  { %v1589_v43 = vsub.f32 %v1428_v2, %v542_v22  ;;  %v1592_v61 = vsub.f32 %v1425_v1, %v541_v3  ;;  %v621_v13 = vmul.f32 %v589_v4, %v589_v4  ;;  %v622_v24 = vmul.f32 %v590_v63, %v590_v63 }
 0x1c7   :  { %v512_v6 = vpop.xlane.xlu1 %511  ;;  %v510_v15 = vpop.xlane.xlu0 %509 }
 0x1c8   :  { %v544_v18 = vmul.f32 0.03125, %v512_v6  ;;  %v543_v34 = vmul.f32 0.03125, %v510_v15  ;;  %671 = vadd.xlane.f32.xlu1 %v624_v12  ;;  %665 = vadd.xlane.f32.xlu0 %v621_v13  ;;  %v605_v51 = vmul.f32 %v1286_v30, %v1592_v61  ;;  %v606_v11 = vmul.f32 %v1286_v30, %v1589_v43 }
 0x1ca   :  { %v1597_v25 = vsub.f32 %v1438_v8, %v544_v18  ;;  %v1600_v2 = vsub.f32 %v1435_v5, %v543_v34  ;;  %v637_v1 = vmul.f32 %v605_v51, %v605_v51  ;;  %v638_v29 = vmul.f32 %v606_v11, %v606_v11  ;;  %v1611_v11 = vld [vmem:[%s1720_s3] ss:$0 sm:$0xff]  ;;  %s1242_s3 = smov [#allocation7]  }
 0x1cc   :  { %667 = vadd.xlane.f32.xlu1 %v622_v24  ;;  %697 = vadd.xlane.f32.xlu0 %v637_v1  ;;  %v607_v28 = vmul.f32 %v1286_v30, %v1600_v2  ;;  %v608_v32 = vmul.f32 %v1286_v30, %v1597_v25 }
 0x1ce   :  { %v639_v41 = vmul.f32 %v607_v28, %v607_v28  ;;  %v640_v8 = vmul.f32 %v608_v32, %v608_v32  ;;  %v1617_v32 = vld [vmem:[%s1721_s4] ss:$0 sm:$0xff]  ;;  %s946_s4 = sshll.u32 %s1242_s3, 4  ;;  %s947_s4 = int_to_ptr.vmem [resolvable:$true] %s946_s4 }
 0x1cf   :  { %s1211_s8 = scalar_lea.vmem %s947_s4, 4096  ;;  %p1216_p11 = scmp.lt.s32.totalorder %s947_s4, %s947_s4 }
 0x1d0   :  { %699 = vadd.xlane.f32.xlu1 %v638_v29  ;;  %701 = vadd.xlane.f32.xlu0 %v639_v41  ;;  %p1212_p10 = scmp.ne.s32.totalorder %s947_s4, %s1211_s8  ;;  %p1217_p12 = scmp.lt.s32.totalorder %s1211_s8, %s1211_s8 }
 0x1d2   :  { %p1218_p13 = por %p1217_p12, %p1216_p11 }
 0x1d4   :  { %703 = vadd.xlane.f32.xlu1 %v640_v8  ;;  %p1219_p0 = pnand %p1218_p13, %p1212_p10 }
 0x21d   :  { %v646_v5 = vpop.xlane.xlu0 %645 }
 0x21e   :  { %v707_v42 = vmul.f32 0.03125, %v646_v5 }
 0x220   :  { %v739_v56 = vadd.f32 1e-06, %v707_v42 }
 0x221   :  { %v648_v45 = vpop.xlane.xlu1 %647  ;;  %v678_v46 = vpop.xlane.xlu0 %677 }
 0x222   :  { %1107 = vrsqrt.f32 %v739_v56  ;;  %v708_v16 = vmul.f32 0.03125, %v648_v45  ;;  %v723_v52 = vmul.f32 0.03125, %v678_v46 }
 0x224   :  { %v740_v53 = vadd.f32 1e-06, %v708_v16  ;;  %v755_v48 = vadd.f32 1e-06, %v723_v52 }
 0x225   :  { %v680_v62 = vpop.xlane.xlu1 %679  ;;  %v642_v58 = vpop.xlane.xlu0 %641 }
 0x226   :  { %1109 = vrsqrt.f32 %v740_v53  ;;  %v724_v59 = vmul.f32 0.03125, %v680_v62  ;;  %v705_v22 = vmul.f32 0.03125, %v642_v58 }
 0x227   :  { %1111 = vrsqrt.f32 %v755_v48 }
 0x228   :  { %v756_v30 = vadd.f32 1e-06, %v724_v59  ;;  %v737_v3 = vadd.f32 1e-06, %v705_v22 }
 0x229   :  { %v644_v4 = vpop.xlane.xlu1 %643  ;;  %v674_v63 = vpop.xlane.xlu0 %673 }
 0x22a   :  { %1113 = vrsqrt.f32 %v756_v30  ;;  %v706_v12 = vmul.f32 0.03125, %v644_v4  ;;  %v721_v13 = vmul.f32 0.03125, %v674_v63 }
 0x22b   :  { %1115 = vrsqrt.f32 %v737_v3 }
 0x22c   :  { %v738_v6 = vadd.f32 1e-06, %v706_v12  ;;  %v753_v15 = vadd.f32 1e-06, %v721_v13 }
 0x22d   :  { %v676_v18 = vpop.xlane.xlu1 %675  ;;  %v654_v34 = vpop.xlane.xlu0 %653 }
 0x22e   :  { %1117 = vrsqrt.f32 %v738_v6  ;;  %v722_v51 = vmul.f32 0.03125, %v676_v18  ;;  %v711_v24 = vmul.f32 0.03125, %v654_v34 }
 0x22f   :  { %v1108_v1 = vpop.eup %1107  ;;  %1119 = vrsqrt.f32 %v753_v15 }
 0x230   :  { %v803_v28 = vmul.f32 %v1108_v1, %v1452_v23  ;;  %v754_v29 = vadd.f32 1e-06, %v722_v51  ;;  %v743_v41 = vadd.f32 1e-06, %v711_v24 }
 0x231   :  { %v656_v8 = vpop.xlane.xlu1 %655  ;;  %v686_v5 = vpop.xlane.xlu0 %685 }
 0x232   :  { %v841_v42 = vmul.f32 %v1611_v11, %v803_v28  ;;  %1121 = vrsqrt.f32 %v754_v29  ;;  %v712_v56 = vmul.f32 0.03125, %v656_v8  ;;  %v727_v45 = vmul.f32 0.03125, %v686_v5 }
 0x233   :  { %v1110_v46 = vpop.eup %1109  ;;  %1123 = vrsqrt.f32 %v743_v41 }
 0x234   :  { %v1112_v16 = vpop.eup %1111  ;;  %v879_v52 = vadd.f32 %v1617_v32, %v841_v42  ;;  %v804_v23 = vmul.f32 %v1110_v46, %v1457_v33  ;;  %v744_v53 = vadd.f32 1e-06, %v712_v56  ;;  %v759_v48 = vadd.f32 1e-06, %v727_v45 }
 0x235   :  { %v819_v62 = vmul.f32 %v1112_v16, %v1449_v21  ;;  %v688_v58 = vpop.xlane.xlu1 %687  ;;  %v650_v59 = vpop.xlane.xlu0 %649 }
 0x236   :  { %911 = vst [vmem:[#allocation7 + $0x10] sm:$0xff] %v879_v52  ;;  %v842_v22 = vmul.f32 %v1611_v11, %v804_v23  ;;  %1125 = vrsqrt.f32 %v744_v53  ;;  %v728_v30 = vmul.f32 0.03125, %v688_v58  ;;  %v709_v3 = vmul.f32 0.03125, %v650_v59 }
 0x237   :  { %v1114_v4 = vpop.eup %1113  ;;  %v857_v63 = vmul.f32 %v1611_v11, %v819_v62  ;;  %1127 = vrsqrt.f32 %v759_v48 }
 0x238   :  { %v1116_v12 = vpop.eup %1115  ;;  %v880_v13 = vadd.f32 %v1617_v32, %v842_v22  ;;  %v820_v33 = vmul.f32 %v1114_v4, %v1469_v40  ;;  %v760_v6 = vadd.f32 1e-06, %v728_v30  ;;  %v741_v15 = vadd.f32 1e-06, %v709_v3 }
 0x239   :  { %v895_v21 = vadd.f32 %v1617_v32, %v857_v63  ;;  %v801_v18 = vmul.f32 %v1116_v12, %v1460_v37  ;;  %v652_v34 = vpop.xlane.xlu1 %651  ;;  %v682_v51 = vpop.xlane.xlu0 %681 }
 0x23a   :  { %912 = vst [vmem:[#allocation7 + $0x18] sm:$0xff] %v880_v13  ;;  %v858_v24 = vmul.f32 %v1611_v11, %v820_v33  ;;  %1129 = vrsqrt.f32 %v760_v6  ;;  %v710_v1 = vmul.f32 0.03125, %v652_v34  ;;  %v725_v28 = vmul.f32 0.03125, %v682_v51 }
 0x23b   :  { %v1118_v29 = vpop.eup %1117  ;;  %927 = vst [vmem:[#allocation7 + $0x90] sm:$0xff] %v895_v21  ;;  %v839_v41 = vmul.f32 %v1611_v11, %v801_v18  ;;  %1131 = vrsqrt.f32 %v741_v15 }
 0x23c   :  { %v1120_v40 = vpop.eup %1119  ;;  %v896_v8 = vadd.f32 %v1617_v32, %v858_v24  ;;  %v802_v5 = vmul.f32 %v1118_v29, %v1480_v44  ;;  %v742_v42 = vadd.f32 1e-06, %v710_v1  ;;  %v757_v37 = vadd.f32 1e-06, %v725_v28 }
 0x23d   :  { %v877_v56 = vadd.f32 %v1617_v32, %v839_v41  ;;  %v817_v45 = vmul.f32 %v1120_v40, %v1472_v35  ;;  %v684_v46 = vpop.xlane.xlu1 %683  ;;  %v662_v16 = vpop.xlane.xlu0 %661 }
 0x23e   :  { %928 = vst [vmem:[#allocation7 + $0x98] sm:$0xff] %v896_v8  ;;  %v840_v52 = vmul.f32 %v1611_v11, %v802_v5  ;;  %1133 = vrsqrt.f32 %v742_v42  ;;  %v726_v23 = vmul.f32 0.03125, %v684_v46  ;;  %v715_v53 = vmul.f32 0.03125, %v662_v16 }
 0x23f   :  { %v1122_v48 = vpop.eup %1121  ;;  %909 = vst [vmem:[#allocation7] sm:$0xff] %v877_v56  ;;  %v855_v62 = vmul.f32 %v1611_v11, %v817_v45  ;;  %1135 = vrsqrt.f32 %v757_v37 }
 0x240   :  { %v1124_v44 = vpop.eup %1123  ;;  %v878_v58 = vadd.f32 %v1617_v32, %v840_v52  ;;  %v818_v59 = vmul.f32 %v1122_v48, %v1477_v9  ;;  %v758_v22 = vadd.f32 1e-06, %v726_v23  ;;  %v747_v35 = vadd.f32 1e-06, %v715_v53 }
 0x241   :  { %v893_v30 = vadd.f32 %v1617_v32, %v855_v62  ;;  %v807_v3 = vmul.f32 %v1124_v44, %v1492_v50  ;;  %v664_v4 = vpop.xlane.xlu1 %663  ;;  %v694_v63 = vpop.xlane.xlu0 %693 }
 0x242   :  { %910 = vst [vmem:[#allocation7 + $0x8] sm:$0xff] %v878_v58  ;;  %v856_v12 = vmul.f32 %v1611_v11, %v818_v59  ;;  %1137 = vrsqrt.f32 %v758_v22  ;;  %v716_v13 = vmul.f32 0.03125, %v664_v4  ;;  %v731_v33 = vmul.f32 0.03125, %v694_v63 }
 0x243   :  { %v1126_v6 = vpop.eup %1125  ;;  %925 = vst [vmem:[#allocation7 + $0x80] sm:$0xff] %v893_v30  ;;  %v845_v15 = vmul.f32 %v1611_v11, %v807_v3  ;;  %1139 = vrsqrt.f32 %v747_v35 }
 0x244   :  { %v1128_v9 = vpop.eup %1127  ;;  %v894_v21 = vadd.f32 %v1617_v32, %v856_v12  ;;  %v808_v18 = vmul.f32 %v1126_v6, %v1489_v19  ;;  %v748_v34 = vadd.f32 1e-06, %v716_v13  ;;  %v763_v50 = vadd.f32 1e-06, %v731_v33 }
 0x245   :  { %v883_v51 = vadd.f32 %v1617_v32, %v845_v15  ;;  %v823_v24 = vmul.f32 %v1128_v9, %v1500_v57  ;;  %v696_v1 = vpop.xlane.xlu1 %695  ;;  %v658_v28 = vpop.xlane.xlu0 %657 }
 0x246   :  { %926 = vst [vmem:[#allocation7 + $0x88] sm:$0xff] %v894_v21  ;;  %v846_v29 = vmul.f32 %v1611_v11, %v808_v18  ;;  %1141 = vrsqrt.f32 %v748_v34  ;;  %v732_v41 = vmul.f32 0.03125, %v696_v1  ;;  %v713_v40 = vmul.f32 0.03125, %v658_v28 }
 0x247   :  { %v1130_v8 = vpop.eup %1129  ;;  %915 = vst [vmem:[#allocation7 + $0x30] sm:$0xff] %v883_v51  ;;  %v861_v5 = vmul.f32 %v1611_v11, %v823_v24  ;;  %1143 = vrsqrt.f32 %v763_v50 }
 0x248   :  { %v1132_v19 = vpop.eup %1131  ;;  %v884_v42 = vadd.f32 %v1617_v32, %v846_v29  ;;  %v824_v37 = vmul.f32 %v1130_v8, %v1497_v31  ;;  %v764_v56 = vadd.f32 1e-06, %v732_v41  ;;  %v745_v57 = vadd.f32 1e-06, %v713_v40 }
 0x249   :  { %v899_v45 = vadd.f32 %v1617_v32, %v861_v5  ;;  %v805_v46 = vmul.f32 %v1132_v19, %v1512_v60  ;;  %v660_v16 = vpop.xlane.xlu1 %659  ;;  %v690_v52 = vpop.xlane.xlu0 %689 }
 0x24a   :  { %916 = vst [vmem:[#allocation7 + $0x38] sm:$0xff] %v884_v42  ;;  %v862_v23 = vmul.f32 %v1611_v11, %v824_v37  ;;  %1145 = vrsqrt.f32 %v764_v56  ;;  %v714_v53 = vmul.f32 0.03125, %v660_v16  ;;  %v729_v48 = vmul.f32 0.03125, %v690_v52 }
 0x24b   :  { %v1134_v62 = vpop.eup %1133  ;;  %931 = vst [vmem:[#allocation7 + $0xb0] sm:$0xff] %v899_v45  ;;  %v843_v44 = vmul.f32 %v1611_v11, %v805_v46  ;;  %1147 = vrsqrt.f32 %v745_v57 }
 0x24c   :  { %v1136_v31 = vpop.eup %1135  ;;  %v900_v58 = vadd.f32 %v1617_v32, %v862_v23  ;;  %v806_v59 = vmul.f32 %v1134_v62, %v1509_v55  ;;  %v746_v22 = vadd.f32 1e-06, %v714_v53  ;;  %v761_v60 = vadd.f32 1e-06, %v729_v48 }
 0x24d   :  { %v881_v35 = vadd.f32 %v1617_v32, %v843_v44  ;;  %v821_v30 = vmul.f32 %v1136_v31, %v1520_v7  ;;  %v692_v3 = vpop.xlane.xlu1 %691  ;;  %v670_v4 = vpop.xlane.xlu0 %669 }
 0x24e   :  { %932 = vst [vmem:[#allocation7 + $0xb8] sm:$0xff] %v900_v58  ;;  %v844_v63 = vmul.f32 %v1611_v11, %v806_v59  ;;  %1149 = vrsqrt.f32 %v746_v22  ;;  %v730_v12 = vmul.f32 0.03125, %v692_v3  ;;  %v719_v13 = vmul.f32 0.03125, %v670_v4 }
 0x24f   :  { %v1138_v33 = vpop.eup %1137  ;;  %913 = vst [vmem:[#allocation7 + $0x20] sm:$0xff] %v881_v35  ;;  %v859_v6 = vmul.f32 %v1611_v11, %v821_v30  ;;  %1151 = vrsqrt.f32 %v761_v60 }
 0x250   :  { %v1140_v55 = vpop.eup %1139  ;;  %v882_v15 = vadd.f32 %v1617_v32, %v844_v63  ;;  %v822_v9 = vmul.f32 %v1138_v33, %v1517_v14  ;;  %v762_v21 = vadd.f32 1e-06, %v730_v12  ;;  %v751_v7 = vadd.f32 1e-06, %v719_v13 }
 0x251   :  { %v897_v18 = vadd.f32 %v1617_v32, %v859_v6  ;;  %v811_v34 = vmul.f32 %v1140_v55, %v1532_v10  ;;  %v672_v50 = vpop.xlane.xlu1 %671  ;;  %v666_v51 = vpop.xlane.xlu0 %665 }
 0x252   :  { %914 = vst [vmem:[#allocation7 + $0x28] sm:$0xff] %v882_v15  ;;  %v860_v24 = vmul.f32 %v1611_v11, %v822_v9  ;;  %1153 = vrsqrt.f32 %v762_v21  ;;  %v720_v1 = vmul.f32 0.03125, %v672_v50  ;;  %v717_v28 = vmul.f32 0.03125, %v666_v51 }
 0x253   :  { %v1142_v29 = vpop.eup %1141  ;;  %929 = vst [vmem:[#allocation7 + $0xa0] sm:$0xff] %v897_v18  ;;  %v849_v41 = vmul.f32 %v1611_v11, %v811_v34  ;;  %1155 = vrsqrt.f32 %v751_v7 }
 0x254   :  { %v1144_v14 = vpop.eup %1143  ;;  %v898_v40 = vadd.f32 %v1617_v32, %v860_v24  ;;  %v812_v8 = vmul.f32 %v1142_v29, %v1529_v27  ;;  %v752_v5 = vadd.f32 1e-06, %v720_v1  ;;  %v749_v10 = vadd.f32 1e-06, %v717_v28 }
 0x255   :  { %v887_v19 = vadd.f32 %v1617_v32, %v849_v41  ;;  %v827_v42 = vmul.f32 %v1144_v14, %v1540_v17  ;;  %v668_v37 = vpop.xlane.xlu1 %667  ;;  %v698_v56 = vpop.xlane.xlu0 %697 }
 0x256   :  { %930 = vst [vmem:[#allocation7 + $0xa8] sm:$0xff] %v898_v40  ;;  %v850_v57 = vmul.f32 %v1611_v11, %v812_v8  ;;  %1157 = vrsqrt.f32 %v752_v5  ;;  %v718_v45 = vmul.f32 0.03125, %v668_v37  ;;  %v733_v46 = vmul.f32 0.03125, %v698_v56 }
 0x257   :  { %v1146_v16 = vpop.eup %1145  ;;  %919 = vst [vmem:[#allocation7 + $0x50] sm:$0xff] %v887_v19  ;;  %v865_v52 = vmul.f32 %v1611_v11, %v827_v42  ;;  %1159 = vrsqrt.f32 %v749_v10 }
 0x258   :  { %v1148_v27 = vpop.eup %1147  ;;  %v888_v23 = vadd.f32 %v1617_v32, %v850_v57  ;;  %v828_v53 = vmul.f32 %v1146_v16, %v1537_v47  ;;  %v750_v48 = vadd.f32 1e-06, %v718_v45  ;;  %v765_v17 = vadd.f32 1e-06, %v733_v46 }
 0x259   :  { %v903_v62 = vadd.f32 %v1617_v32, %v865_v52  ;;  %v809_v44 = vmul.f32 %v1148_v27, %v1552_v20  ;;  %v700_v31 = vpop.xlane.xlu1 %699  ;;  %v702_v58 = vpop.xlane.xlu0 %701 }
 0x25a   :  { %920 = vst [vmem:[#allocation7 + $0x58] sm:$0xff] %v888_v23  ;;  %v866_v59 = vmul.f32 %v1611_v11, %v828_v53  ;;  %1161 = vrsqrt.f32 %v750_v48  ;;  %v734_v22 = vmul.f32 0.03125, %v700_v31  ;;  %v735_v60 = vmul.f32 0.03125, %v702_v58 }
 0x25b   :  { %v1150_v35 = vpop.eup %1149  ;;  %935 = vst [vmem:[#allocation7 + $0xd0] sm:$0xff] %v903_v62  ;;  %v847_v30 = vmul.f32 %v1611_v11, %v809_v44  ;;  %1163 = vrsqrt.f32 %v765_v17 }
 0x25c   :  { %v1152_v47 = vpop.eup %1151  ;;  %v904_v3 = vadd.f32 %v1617_v32, %v866_v59  ;;  %v810_v4 = vmul.f32 %v1150_v35, %v1549_v0  ;;  %v766_v63 = vadd.f32 1e-06, %v734_v22  ;;  %v767_v20 = vadd.f32 1e-06, %v735_v60 }
 0x25d   :  { %v885_v12 = vadd.f32 %v1617_v32, %v847_v30  ;;  %v825_v13 = vmul.f32 %v1152_v47, %v1560_v36  ;;  %v704_v33 = vpop.xlane.xlu1 %703 }
 0x25e   :  { %936 = vst [vmem:[#allocation7 + $0xd8] sm:$0xff] %v904_v3  ;;  %v848_v6 = vmul.f32 %v1611_v11, %v810_v4  ;;  %1165 = vrsqrt.f32 %v766_v63  ;;  %v736_v55 = vmul.f32 0.03125, %v704_v33 }
 0x25f   :  { %v1154_v15 = vpop.eup %1153  ;;  %917 = vst [vmem:[#allocation7 + $0x40] sm:$0xff] %v885_v12  ;;  %v863_v9 = vmul.f32 %v1611_v11, %v825_v13  ;;  %1167 = vrsqrt.f32 %v767_v20 }
 0x260   :  { %v1156_v21 = vpop.eup %1155  ;;  %v886_v0 = vadd.f32 %v1617_v32, %v848_v6  ;;  %v826_v7 = vmul.f32 %v1154_v15, %v1557_v26  ;;  %v768_v18 = vadd.f32 1e-06, %v736_v55 }
 0x261   :  { %v901_v34 = vadd.f32 %v1617_v32, %v863_v9  ;;  %v815_v36 = vmul.f32 %v1156_v21, %v1572_v39 }
 0x262   :  { %918 = vst [vmem:[#allocation7 + $0x48] sm:$0xff] %v886_v0  ;;  %v864_v50 = vmul.f32 %v1611_v11, %v826_v7  ;;  %1169 = vrsqrt.f32 %v768_v18 }
 0x263   :  { %v1158_v51 = vpop.eup %1157  ;;  %933 = vst [vmem:[#allocation7 + $0xc0] sm:$0xff] %v901_v34  ;;  %v853_v24 = vmul.f32 %v1611_v11, %v815_v36 }
 0x264   :  { %v1160_v1 = vpop.eup %1159  ;;  %v902_v28 = vadd.f32 %v1617_v32, %v864_v50  ;;  %v816_v29 = vmul.f32 %v1158_v51, %v1569_v38 }
 0x265   :  { %v891_v26 = vadd.f32 %v1617_v32, %v853_v24  ;;  %v813_v41 = vmul.f32 %v1160_v1, %v1580_v49 }
 0x266   :  { %934 = vst [vmem:[#allocation7 + $0xc8] sm:$0xff] %v902_v28  ;;  %v854_v39 = vmul.f32 %v1611_v11, %v816_v29 }
 0x267   :  { %v1162_v14 = vpop.eup %1161  ;;  %923 = vst [vmem:[#allocation7 + $0x70] sm:$0xff] %v891_v26  ;;  %v851_v40 = vmul.f32 %v1611_v11, %v813_v41 }
 0x268   :  { %v1164_v8 = vpop.eup %1163  ;;  %v892_v5 = vadd.f32 %v1617_v32, %v854_v39  ;;  %v814_v10 = vmul.f32 %v1162_v14, %v1577_v54 }
 0x269   :  { %v889_v19 = vadd.f32 %v1617_v32, %v851_v40  ;;  %v829_v38 = vmul.f32 %v1164_v8, %v1592_v61 }
 0x26a   :  { %924 = vst [vmem:[#allocation7 + $0x78] sm:$0xff] %v892_v5  ;;  %v852_v42 = vmul.f32 %v1611_v11, %v814_v10 }
 0x26b   :  { %v1166_v49 = vpop.eup %1165  ;;  %921 = vst [vmem:[#allocation7 + $0x60] sm:$0xff] %v889_v19  ;;  %v867_v37 = vmul.f32 %v1611_v11, %v829_v38 }
 0x26c   :  { %v1168_v56 = vpop.eup %1167  ;;  %v890_v57 = vadd.f32 %v1617_v32, %v852_v42  ;;  %v830_v45 = vmul.f32 %v1166_v49, %v1589_v43 }
 0x26d   :  { %v905_v46 = vadd.f32 %v1617_v32, %v867_v37  ;;  %v831_v54 = vmul.f32 %v1168_v56, %v1600_v2 }
 0x26e   :  { %922 = vst [vmem:[#allocation7 + $0x68] sm:$0xff] %v890_v57  ;;  %v868_v16 = vmul.f32 %v1611_v11, %v830_v45 }
 0x26f   :  { %v1170_v61 = vpop.eup %1169  ;;  %937 = vst [vmem:[#allocation7 + $0xe0] sm:$0xff] %v905_v46  ;;  %v869_v52 = vmul.f32 %v1611_v11, %v831_v54 }
 0x270   :  { %v906_v27 = vadd.f32 %v1617_v32, %v868_v16  ;;  %v832_v23 = vmul.f32 %v1170_v61, %v1597_v25 }
 0x271   :  { %v907_v53 = vadd.f32 %v1617_v32, %v869_v52 }
 0x272   :  { %938 = vst [vmem:[#allocation7 + $0xe8] sm:$0xff] %v906_v27  ;;  %v870_v43 = vmul.f32 %v1611_v11, %v832_v23 }
 0x273   :  { %939 = vst [vmem:[#allocation7 + $0xf0] sm:$0xff] %v907_v53 }
 0x274   :  { %v908_v2 = vadd.f32 %v1617_v32, %v870_v43 }
 0x276   :  { %940 = vst [vmem:[#allocation7 + $0xf8] sm:$0xff] %v908_v2 }
 0x277   :  { %1222 = shalt.err (!%p1219_p0)
}
 0x278   :  { %s1243_s9 = smov 128   ;;  %s1244_s10 = smov 8  }
 0x279   :  { %952 = dma.vmem_to_hbm [thread:$0]  %s947_s4, 4096, %s1722_s5, [#allocation4], %s1243_s9, %s1243_s9, %s1244_s10  }
 0x27a   :  { %1235 = dma.done.wait [#allocation4], 4096  }
 0x27b   :  { %1236 = vsyncadd [#allocation4], 4294963200 }
 0x27c   :  { %956 = vsyncpa [#allocation3], 1 }
 0x27d   :  { %957 = vsyncpa [#allocation6], 1 }
 0x27e   :  { %958 = vsyncpa [#allocation4], 1 }

</bundles_post_ra>
